<compile_context>
chip_gen: v7x
topology: tpu7x:2x2x1
jax: 0.10.0
libtpu: 0.0.40
codegen_flags: <defaults>
</compile_context>

<pallas_src>
import functools

import jax
import jax.numpy as jnp
from jax import lax
from jax.experimental import pallas as pl
from jax.experimental.pallas import tpu as pltpu


def _round_up(x, m):
    return ((x + m - 1) // m) * m


def _cdiv(a, b):
    return (a + b - 1) // b


# Single-buffer constant-index weight blocks when the API supports it.
try:
    pl.BlockSpec((8, 128), lambda i, j: (0, 0), pipeline_mode=pl.Buffered(1))
    _WEIGHT_BUFFERS = 1

    def _weight_spec(shape, index_map):
        return pl.BlockSpec(shape, index_map, pipeline_mode=pl.Buffered(1))
except Exception:  # pragma: no cover - older API fallback
    _WEIGHT_BUFFERS = 2

    def _weight_spec(shape, index_map):
        return pl.BlockSpec(shape, index_map)


def _vmem_capacity_bytes():
    try:
        return int(pltpu.get_tpu_info().vmem_capacity_bytes)
    except Exception:
        return 64 * 1024 * 1024  # conservative: v7x per-TC VMEM


def _num_tensorcores():
    try:
        return max(1, int(getattr(jax.devices()[0], "num_cores", 1)))
    except Exception:
        return 1


# ----------------------------------------------------------------------------
# Fused kernel: L stacked tanh-RNN layers + Linear head.
# ----------------------------------------------------------------------------
def fused_rnn_kernel(*refs, num_layers, seq_len, time_chunk, needs_mask):
    """One (batch_block, time_chunk) grid step.

    refs (L > 1): x, w_ih0, w_ih_rest, w_hh, b, fc_w, fc_b, out, h_scratch, z_scratch
    refs (L == 1): same without w_ih_rest.

    x      : (tT, Bb, Dp)   time-major input chunk (compute dtype, e.g. bf16)
    w_ih0  : (Dp, Hp)       layer-0 input->hidden weight (transposed, padded)
    w_ihr  : (L-1, Hp, Hp)  layers 1.. input->hidden weights
    w_hh   : (L, Hp, Hp)    hidden->hidden weights
    b      : (L, 1, Hp) f32 combined biases (b_ih + b_hh)
    fc_w   : (Hp, Op) f32   FC weight (transposed, padded)
    fc_b   : (1, Op) f32    FC bias
    out    : (Bb, Op) f32   FC output for this batch block
    h      : (L, Bb, Hp) f32 scratch, per-layer running hidden state
    z      : (tT, Bb, Hp) f32 scratch, hoisted x@W_ih chunk, reused in place as
             the per-step activations feeding the next layer
    """
    if num_layers > 1:
        (x_ref, wih0_ref, wihr_ref, whh_ref, b_ref, fcw_ref, fcb_ref,
         out_ref, h_ref, z_ref) = refs
    else:
        (x_ref, wih0_ref, whh_ref, b_ref, fcw_ref, fcb_ref,
         out_ref, h_ref, z_ref) = refs
        wihr_ref = None

    t_idx = pl.program_id(1)
    tT, Bb, Dp = x_ref.shape
    Hp = whh_ref.shape[-1]
    cdt = whh_ref.dtype  # MXU operand dtype (bf16); accumulation stays f32.

    # New batch block -> reset all hidden states (h0 = 0, as in nn.RNN).
    @pl.when(t_idx == 0)
    def _():
        h_ref[...] = jnp.zeros_like(h_ref)

    for layer in range(num_layers):
        # --- hoisted input->hidden matmul: one big MXU matmul per chunk ------
        if layer == 0:
            inp = x_ref[...].reshape(tT * Bb, Dp).astype(cdt)
            w_in = wih0_ref[...]
        else:
            inp = z_ref[...].reshape(tT * Bb, Hp).astype(cdt)
            w_in = wihr_ref[layer - 1]
        z = jnp.dot(inp, w_in, preferred_element_type=jnp.float32) + b_ref[layer]
        z_ref[...] = z.reshape(tT, Bb, Hp)

        # --- serial recurrence: h = tanh(Z[t] + h @ W_hh) ---------------------
        w_hh = whh_ref[layer]                 # hoisted, loop-invariant
        keep_steps = layer < num_layers - 1   # last layer only needs final h

        def step(t, h, w_hh=w_hh, keep=keep_steps):
            h_new = jnp.tanh(
                z_ref[t]
                + jnp.dot(h.astype(cdt), w_hh,
                          preferred_element_type=jnp.float32))
            if needs_mask:
                # Padded trailing timesteps must not update the hidden state.
                global_t = t_idx * time_chunk + t
                h_new = jnp.where(global_t < seq_len, h_new, h)
            if keep:                          # feed next layer, stays in VMEM
                z_ref[t] = h_new
            return h_new

        h_ref[layer] = lax.fori_loop(0, tT, step, h_ref[layer],
                                     unroll=min(tT, 8))

    # --- Linear head on the final hidden state, only at the last chunk --------
    @pl.when(t_idx == pl.num_programs(1) - 1)
    def _():
        out_ref[...] = (
            jnp.dot(h_ref[num_layers - 1], fcw_ref[...],
                    preferred_element_type=jnp.float32)
            + fcb_ref[...]
        ).astype(out_ref.dtype)


# ----------------------------------------------------------------------------
# VMEM planning: account for every resident buffer, pick tT + vmem limit.
# ----------------------------------------------------------------------------
def _vmem_plan(T, b_blk, Dp, Hp, Op, L, x_bytes, w_bytes):
    # Resident for the whole grid: weights (x buffer count), h scratch, output.
    w_elems = Dp * Hp + max(L - 1, 0) * Hp * Hp + L * Hp * Hp
    fixed = (w_elems * w_bytes + (L * Hp + Hp * Op + Op) * 4) * _WEIGHT_BUFFERS
    fixed += L * b_blk * Hp * 4          # h_ref scratch
    fixed += 2 * b_blk * Op * 4          # double-buffered output block
    # Per-timestep: double-buffered input chunk + Z/activation scratch.
    per_t = b_blk * (2 * Dp * x_bytes + Hp * 4)

    capacity = _vmem_capacity_bytes()
    budget = int(capacity * 0.8) - fixed - (2 << 20)
    max_t = max(1, budget // per_t)
    tT = int(max(1, min(T, max_t)))

    needed = fixed + per_t * tT
    vmem_limit = int(min(int(capacity * 0.9),
                         max(needed + (8 << 20), 32 << 20)))
    return tT, vmem_limit


# ----------------------------------------------------------------------------
# Wrapper
# ----------------------------------------------------------------------------
@functools.partial(jax.jit, static_argnames=("output_dim",))
def rnn_forward(x_btd, prepped, output_dim):
    """Equivalent of RNN.forward: multi-layer tanh RNN, then fc(out[:, -1, :])."""
    B, T, D = x_btd.shape
    w_ih0 = prepped["w_ih0"]            # (Dp, Hp)
    w_ihr = prepped.get("w_ih_rest")    # (L-1, Hp, Hp) or None
    w_hh = prepped["w_hh"]              # (L, Hp, Hp)
    bias = prepped["b"]                 # (L, 1, Hp) f32
    fc_w = prepped["fc_w"]              # (Hp, Op)  f32
    fc_b = prepped["fc_b"]              # (1, Op)   f32
    L = w_hh.shape[0]
    Dp, Hp = w_ih0.shape
    Op = fc_w.shape[1]
    cdt = w_hh.dtype
    elem = jnp.dtype(cdt).itemsize

    # ---- batch blocking ------------------------------------------------------
    bsub = 8 * max(1, 4 // elem)                       # sublane tile per dtype
    Bp = _round_up(max(B, bsub), bsub)
    # Keep the recurrence carry (b_blk, Hp) f32 near register-resident (~128 KiB)
    cap = max(bsub, min(256, ((128 * 1024) // (Hp * 4)) // bsub * bsub))
    n_cores = _num_tensorcores()
    if n_cores > 1 and Bp >= 2 * bsub:
        b_blk = min(cap, _round_up(_cdiv(Bp, n_cores), bsub))
    else:
        b_blk = min(cap, Bp)
    Bp = _round_up(Bp, b_blk)
    nb = Bp // b_blk

    # ---- time chunking from the real VMEM budget -----------------------------
    tT, vmem_limit = _vmem_plan(T, b_blk, Dp, Hp, Op, L, elem, elem)
    nt = _cdiv(T, tT)
    T_pad = nt * tT
    needs_mask = T_pad != T

    # batch-first (B, T, D) -> time-major (T_pad, Bp, Dp), zero-padded, MXU dtype.
    x_t = jnp.transpose(x_btd, (1, 0, 2)).astype(cdt)
    x_t = jnp.pad(x_t, ((0, T_pad - T), (0, Bp - B), (0, Dp - D)))

    const2 = lambda bi, ti: (0, 0)
    const3 = lambda bi, ti: (0, 0, 0)

    in_specs = [pl.BlockSpec((tT, b_blk, Dp), lambda bi, ti: (ti, bi, 0)),
                _weight_spec(w_ih0.shape, const2)]
    args = [x_t, w_ih0]
    if L > 1:
        in_specs.append(_weight_spec(w_ihr.shape, const3))
        args.append(w_ihr)
    in_specs += [_weight_spec(w_hh.shape, const3),
                 _weight_spec(bias.shape, const3),
                 _weight_spec(fc_w.shape, const2),
                 _weight_spec(fc_b.shape, const2)]
    args += [w_hh, bias, fc_w, fc_b]

    out_padded = pl.pallas_call(
        functools.partial(fused_rnn_kernel, num_layers=L, seq_len=T,
                          time_chunk=tT, needs_mask=needs_mask),
        out_shape=jax.ShapeDtypeStruct((Bp, Op), jnp.float32),
        grid_spec=pltpu.PrefetchScalarGridSpec(
            num_scalar_prefetch=0,
            grid=(nb, nt),
            in_specs=in_specs,
            out_specs=pl.BlockSpec((b_blk, Op), lambda bi, ti: (bi, 0)),
            scratch_shapes=[
                pltpu.VMEM((L, b_blk, Hp), jnp.float32),   # per-layer h state
                pltpu.VMEM((tT, b_blk, Hp), jnp.float32),  # hoisted Z / acts
            ],
        ),
        compiler_params=pltpu.CompilerParams(
            dimension_semantics=("parallel", "arbitrary"),
            vmem_limit_bytes=vmem_limit),
    )(*args)

    return out_padded[:B, :output_dim]


# ----------------------------------------------------------------------------
# Parameters (PyTorch layout) + padded/transposed kernel layout
# ----------------------------------------------------------------------------
def init_params(key, input_dim, hidden_dim, num_layers, output_dim):
    """Raw parameters in PyTorch nn.RNN / nn.Linear layout."""
    layers = []
    bound = 1.0 / jnp.sqrt(hidden_dim)
    for l in range(num_layers):
        d_in = input_dim if l == 0 else hidden_dim
        key, k1, k2, k3, k4 = jax.random.split(key, 5)
        layers.append({
            "w_ih": jax.random.uniform(k1, (hidden_dim, d_in), jnp.float32, -bound, bound),
            "w_hh": jax.random.uniform(k2, (hidden_dim, hidden_dim), jnp.float32, -bound, bound),
            "b_ih": jax.random.uniform(k3, (hidden_dim,), jnp.float32, -bound, bound),
            "b_hh": jax.random.uniform(k4, (hidden_dim,), jnp.float32, -bound, bound),
        })
    key, k1, k2 = jax.random.split(key, 3)
    fc_w = jax.random.uniform(k1, (output_dim, hidden_dim), jnp.float32, -bound, bound)
    fc_b = jax.random.uniform(k2, (output_dim,), jnp.float32, -bound, bound)
    return {"layers": layers, "fc_w": fc_w, "fc_b": fc_b}


def prepare_params(raw, input_dim, hidden_dim, output_dim,
                   compute_dtype=jnp.bfloat16):
    """Transpose + zero-pad raw params into the kernel's lane-aligned layout.

    Recurrence weights are stored in `compute_dtype` (bf16 MXU operands, f32
    accumulation in-kernel). Biases and the FC head stay f32.
    """
    L = len(raw["layers"])
    Dp = _round_up(input_dim, 128)
    Hp = _round_up(hidden_dim, 128)
    Op = _round_up(output_dim, 128)

    def pad_t(w, rows, cols, dtype):
        wt = w.T  # (in, out)
        return jnp.pad(wt, ((0, rows - wt.shape[0]),
                            (0, cols - wt.shape[1]))).astype(dtype)

    prepped = {
        "w_ih0": pad_t(raw["layers"][0]["w_ih"], Dp, Hp, compute_dtype),
        "w_hh": jnp.stack([pad_t(raw["layers"][l]["w_hh"], Hp, Hp, compute_dtype)
                           for l in range(L)]),
        "b": jnp.stack([
            jnp.pad(raw["layers"][l]["b_ih"] + raw["layers"][l]["b_hh"],
                    (0, Hp - hidden_dim))[None, :]
            for l in range(L)]),
        "fc_w": pad_t(raw["fc_w"], Hp, Op, jnp.float32),
        "fc_b": jnp.pad(raw["fc_b"], (0, Op - output_dim))[None, :],
    }
    if L > 1:
        prepped["w_ih_rest"] = jnp.stack(
            [pad_t(raw["layers"][l]["w_ih"], Hp, Hp, compute_dtype)
             for l in range(1, L)])
    return prepped


# Pure-JAX reference (same math, f32, no Pallas, no padding).
def _ref_forward(x_btd, raw):
    h = jnp.transpose(x_btd, (1, 0, 2))   # (T, B, D)
    for layer in raw["layers"]:
        state = jnp.zeros((h.shape[1], layer["w_hh"].shape[0]), jnp.float32)

        def step(s, x_t, layer=layer):
            s = jnp.tanh(x_t @ layer["w_ih"].T + s @ layer["w_hh"].T
                         + layer["b_ih"] + layer["b_hh"])
            return s, s

        _, h = lax.scan(step, state, h)
    return h[-1] @ raw["fc_w"].T + raw["fc_b"]


if __name__ == "__main__":
    # Small shapes consistent with the module's forward: x is (B, T, input_dim).
    B, T = 2, 8
    input_dim, hidden_dim, num_layers, output_dim = 16, 32, 2, 10

    key = jax.random.PRNGKey(0)
    kx, kp = jax.random.split(key)
    x = jax.random.normal(kx, (B, T, input_dim), jnp.float32)
    raw = init_params(kp, input_dim, hidden_dim, num_layers, output_dim)
    prepped = prepare_params(raw, input_dim, hidden_dim, output_dim)  # bf16 MXU operands

    out = jax.block_until_ready(rnn_forward(x, prepped, output_dim))
    ref = _ref_forward(x, raw)

    assert out.shape == (B, output_dim), out.shape
    # bf16 MXU operands (f32 accumulate): tolerance relaxed vs the pure-f32 ref.
    assert jnp.allclose(out, ref, atol=3e-2, rtol=3e-2), (
        float(jnp.max(jnp.abs(out - ref))))

    print("KERNEL_OK")
</pallas_src>

<mosaic_0001>
module attributes {stable_mosaic.version = 11 : i64} {
  func.func @fused_rnn_kernel(%arg0: i32, %arg1: i32, %arg2: memref<8x16x128xbf16, #tpu.memory_space<vmem>>, %arg3: memref<128x128xbf16, #tpu.memory_space<vmem>>, %arg4: memref<1x128x128xbf16, #tpu.memory_space<vmem>>, %arg5: memref<2x128x128xbf16, #tpu.memory_space<vmem>>, %arg6: memref<2x1x128xf32, #tpu.memory_space<vmem>>, %arg7: memref<128x128xf32, #tpu.memory_space<vmem>>, %arg8: memref<1x128xf32, #tpu.memory_space<vmem>>, %arg9: memref<16x128xf32, #tpu.memory_space<vmem>>, %arg10: memref<2x16x128xf32, #tpu.memory_space<vmem>>, %arg11: memref<8x16x128xf32, #tpu.memory_space<vmem>>) attributes {dimension_semantics = [#tpu.dimension_semantics<parallel>, #tpu.dimension_semantics<arbitrary>], iteration_bounds = array<i64: 1, 1>, scalar_prefetch = 0 : i64, scratch_operands = 2 : i64, tpu.core_type = #tpu.core_type<tc>, window_params = [{transform_indices = @transform_0, window_bounds = array<i64: 8, 16, 128>}, {pipeline_mode = #tpu.pipeline_mode<synchronous>, transform_indices = @transform_1, window_bounds = array<i64: 128, 128>}, {pipeline_mode = #tpu.pipeline_mode<synchronous>, transform_indices = @transform_2, window_bounds = array<i64: 1, 128, 128>}, {pipeline_mode = #tpu.pipeline_mode<synchronous>, transform_indices = @transform_3, window_bounds = array<i64: 2, 128, 128>}, {pipeline_mode = #tpu.pipeline_mode<synchronous>, transform_indices = @transform_4, window_bounds = array<i64: 2, 1, 128>}, {pipeline_mode = #tpu.pipeline_mode<synchronous>, transform_indices = @transform_5, window_bounds = array<i64: 128, 128>}, {pipeline_mode = #tpu.pipeline_mode<synchronous>, transform_indices = @transform_6, window_bounds = array<i64: 1, 128>}, {transform_indices = @transform_7, window_bounds = array<i64: 16, 128>}]} {
    %c0_i32 = arith.constant 0 : i32
    %0 = arith.cmpi eq, %arg1, %c0_i32 : i32
    %1 = arith.extui %0 : i1 to i32
    %c0_i32_0 = arith.constant 0 : i32
    %2 = arith.cmpi ne, %1, %c0_i32_0 : i32
    scf.if %2 {
      %cst_117 = arith.constant 0.000000e+00 : f32
      %186 = vector.broadcast %cst_117 : f32 to vector<2x16x128xf32>
      %c0_118 = arith.constant 0 : index
      %c0_119 = arith.constant 0 : index
      %c0_120 = arith.constant 0 : index
      %187 = vector.load %arg10[%c0_118, %c0_119, %c0_120] : memref<2x16x128xf32, #tpu.memory_space<vmem>>, vector<2x16x128xf32>
      tpu.vector_store %arg10[%c0_118, %c0_119, %c0_120], %186 {strides = array<i32>} : memref<2x16x128xf32, #tpu.memory_space<vmem>>, vector<2x16x128xf32>,
    } else {
    }
    %c0 = arith.constant 0 : index
    %c0_1 = arith.constant 0 : index
    %c0_2 = arith.constant 0 : index
    %3 = vector.load %arg2[%c0, %c0_1, %c0_2] : memref<8x16x128xbf16, #tpu.memory_space<vmem>>, vector<8x16x128xbf16>
    %4 = vector.shape_cast %3 : vector<8x16x128xbf16> to vector<128x128xbf16>
    %c0_3 = arith.constant 0 : index
    %c0_4 = arith.constant 0 : index
    %5 = vector.load %arg3[%c0_3, %c0_4] : memref<128x128xbf16, #tpu.memory_space<vmem>>, vector<128x128xbf16>
    %cst = arith.constant dense<0.000000e+00> : vector<128x128xf32>
    %6 = tpu.matmul %4, %5, %cst {dimension_numbers = #tpu.dot_dimension_numbers<[1], [0], [0], [1], [0, 0, 1, 1], [], []>} : vector<128x128xbf16>, vector<128x128xbf16>, vector<128x128xf32> -> vector<128x128xf32>
    %c0_5 = arith.constant 0 : index
    %c0_6 = arith.constant 0 : index
    %c0_7 = arith.constant 0 : index
    %7 = vector.load %arg6[%c0_5, %c0_6, %c0_7] : memref<2x1x128xf32, #tpu.memory_space<vmem>>, vector<1x1x128xf32>
    %8 = vector.shape_cast %7 : vector<1x1x128xf32> to vector<1x128xf32>
    %9 = vector.broadcast %8 : vector<1x128xf32> to vector<128x128xf32>
    %10 = arith.addf %6, %9 : vector<128x128xf32>
    %11 = vector.shape_cast %10 : vector<128x128xf32> to vector<8x16x128xf32>
    %c0_8 = arith.constant 0 : index
    %c0_9 = arith.constant 0 : index
    %c0_10 = arith.constant 0 : index
    %12 = vector.load %arg11[%c0_8, %c0_9, %c0_10] : memref<8x16x128xf32, #tpu.memory_space<vmem>>, vector<8x16x128xf32>
    tpu.vector_store %arg11[%c0_8, %c0_9, %c0_10], %11 {strides = array<i32>} : memref<8x16x128xf32, #tpu.memory_space<vmem>>, vector<8x16x128xf32>,
    %c0_11 = arith.constant 0 : index
    %c0_12 = arith.constant 0 : index
    %c0_13 = arith.constant 0 : index
    %13 = vector.load %arg5[%c0_11, %c0_12, %c0_13] : memref<2x128x128xbf16, #tpu.memory_space<vmem>>, vector<1x128x128xbf16>
    %14 = vector.shape_cast %13 : vector<1x128x128xbf16> to vector<128x128xbf16>
    %c0_14 = arith.constant 0 : index
    %c0_15 = arith.constant 0 : index
    %c0_16 = arith.constant 0 : index
    %15 = vector.load %arg10[%c0_14, %c0_15, %c0_16] : memref<2x16x128xf32, #tpu.memory_space<vmem>>, vector<1x16x128xf32>
    %16 = vector.shape_cast %15 : vector<1x16x128xf32> to vector<16x128xf32>
    %c0_i32_17 = arith.constant 0 : i32
    %17 = arith.index_cast %c0_i32_17 : i32 to index
    %c0_18 = arith.constant 0 : index
    %c0_19 = arith.constant 0 : index
    %18 = vector.load %arg11[%17, %c0_18, %c0_19] : memref<8x16x128xf32, #tpu.memory_space<vmem>>, vector<1x16x128xf32>
    %19 = vector.shape_cast %18 : vector<1x16x128xf32> to vector<16x128xf32>
    %20 = arith.truncf %16 : vector<16x128xf32> to vector<16x128xbf16>
    %cst_20 = arith.constant dense<0.000000e+00> : vector<16x128xf32>
    %21 = tpu.matmul %20, %14, %cst_20 {dimension_numbers = #tpu.dot_dimension_numbers<[1], [0], [0], [1], [0, 0, 1, 1], [], []>} : vector<16x128xbf16>, vector<128x128xbf16>, vector<16x128xf32> -> vector<16x128xf32>
    %22 = arith.addf %19, %21 : vector<16x128xf32>
    %23 = math.tanh %22 : vector<16x128xf32>
    %24 = arith.index_cast %c0_i32_17 : i32 to index
    %c0_21 = arith.constant 0 : index
    %c0_22 = arith.constant 0 : index
    %25 = vector.load %arg11[%24, %c0_21, %c0_22] : memref<8x16x128xf32, #tpu.memory_space<vmem>>, vector<1x16x128xf32>
    %26 = vector.shape_cast %25 : vector<1x16x128xf32> to vector<16x128xf32>
    %27 = vector.shape_cast %23 : vector<16x128xf32> to vector<1x16x128xf32>
    tpu.vector_store %arg11[%24, %c0_21, %c0_22], %27 {strides = array<i32>} : memref<8x16x128xf32, #tpu.memory_space<vmem>>, vector<1x16x128xf32>,
    %c1_i32 = arith.constant 1 : i32
    %28 = arith.index_cast %c1_i32 : i32 to index
    %c0_23 = arith.constant 0 : index
    %c0_24 = arith.constant 0 : index
    %29 = vector.load %arg11[%28, %c0_23, %c0_24] : memref<8x16x128xf32, #tpu.memory_space<vmem>>, vector<1x16x128xf32>
    %30 = vector.shape_cast %29 : vector<1x16x128xf32> to vector<16x128xf32>
    %31 = arith.truncf %23 : vector<16x128xf32> to vector<16x128xbf16>
    %cst_25 = arith.constant dense<0.000000e+00> : vector<16x128xf32>
    %32 = tpu.matmul %31, %14, %cst_25 {dimension_numbers = #tpu.dot_dimension_numbers<[1], [0], [0], [1], [0, 0, 1, 1], [], []>} : vector<16x128xbf16>, vector<128x128xbf16>, vector<16x128xf32> -> vector<16x128xf32>
    %33 = arith.addf %30, %32 : vector<16x128xf32>
    %34 = math.tanh %33 : vector<16x128xf32>
    %35 = arith.index_cast %c1_i32 : i32 to index
    %c0_26 = arith.constant 0 : index
    %c0_27 = arith.constant 0 : index
    %36 = vector.load %arg11[%35, %c0_26, %c0_27] : memref<8x16x128xf32, #tpu.memory_space<vmem>>, vector<1x16x128xf32>
    %37 = vector.shape_cast %36 : vector<1x16x128xf32> to vector<16x128xf32>
    %38 = vector.shape_cast %34 : vector<16x128xf32> to vector<1x16x128xf32>
    tpu.vector_store %arg11[%35, %c0_26, %c0_27], %38 {strides = array<i32>} : memref<8x16x128xf32, #tpu.memory_space<vmem>>, vector<1x16x128xf32>,
    %c2_i32 = arith.constant 2 : i32
    %39 = arith.index_cast %c2_i32 : i32 to index
    %c0_28 = arith.constant 0 : index
    %c0_29 = arith.constant 0 : index
    %40 = vector.load %arg11[%39, %c0_28, %c0_29] : memref<8x16x128xf32, #tpu.memory_space<vmem>>, vector<1x16x128xf32>
    %41 = vector.shape_cast %40 : vector<1x16x128xf32> to vector<16x128xf32>
    %42 = arith.truncf %34 : vector<16x128xf32> to vector<16x128xbf16>
    %cst_30 = arith.constant dense<0.000000e+00> : vector<16x128xf32>
    %43 = tpu.matmul %42, %14, %cst_30 {dimension_numbers = #tpu.dot_dimension_numbers<[1], [0], [0], [1], [0, 0, 1, 1], [], []>} : vector<16x128xbf16>, vector<128x128xbf16>, vector<16x128xf32> -> vector<16x128xf32>
    %44 = arith.addf %41, %43 : vector<16x128xf32>
    %45 = math.tanh %44 : vector<16x128xf32>
    %46 = arith.index_cast %c2_i32 : i32 to index
    %c0_31 = arith.constant 0 : index
    %c0_32 = arith.constant 0 : index
    %47 = vector.load %arg11[%46, %c0_31, %c0_32] : memref<8x16x128xf32, #tpu.memory_space<vmem>>, vector<1x16x128xf32>
    %48 = vector.shape_cast %47 : vector<1x16x128xf32> to vector<16x128xf32>
    %49 = vector.shape_cast %45 : vector<16x128xf32> to vector<1x16x128xf32>
    tpu.vector_store %arg11[%46, %c0_31, %c0_32], %49 {strides = array<i32>} : memref<8x16x128xf32, #tpu.memory_space<vmem>>, vector<1x16x128xf32>,
    %c3_i32 = arith.constant 3 : i32
    %50 = arith.index_cast %c3_i32 : i32 to index
    %c0_33 = arith.constant 0 : index
    %c0_34 = arith.constant 0 : index
    %51 = vector.load %arg11[%50, %c0_33, %c0_34] : memref<8x16x128xf32, #tpu.memory_space<vmem>>, vector<1x16x128xf32>
    %52 = vector.shape_cast %51 : vector<1x16x128xf32> to vector<16x128xf32>
    %53 = arith.truncf %45 : vector<16x128xf32> to vector<16x128xbf16>
    %cst_35 = arith.constant dense<0.000000e+00> : vector<16x128xf32>
    %54 = tpu.matmul %53, %14, %cst_35 {dimension_numbers = #tpu.dot_dimension_numbers<[1], [0], [0], [1], [0, 0, 1, 1], [], []>} : vector<16x128xbf16>, vector<128x128xbf16>, vector<16x128xf32> -> vector<16x128xf32>
    %55 = arith.addf %52, %54 : vector<16x128xf32>
    %56 = math.tanh %55 : vector<16x128xf32>
    %57 = arith.index_cast %c3_i32 : i32 to index
    %c0_36 = arith.constant 0 : index
    %c0_37 = arith.constant 0 : index
    %58 = vector.load %arg11[%57, %c0_36, %c0_37] : memref<8x16x128xf32, #tpu.memory_space<vmem>>, vector<1x16x128xf32>
    %59 = vector.shape_cast %58 : vector<1x16x128xf32> to vector<16x128xf32>
    %60 = vector.shape_cast %56 : vector<16x128xf32> to vector<1x16x128xf32>
    tpu.vector_store %arg11[%57, %c0_36, %c0_37], %60 {strides = array<i32>} : memref<8x16x128xf32, #tpu.memory_space<vmem>>, vector<1x16x128xf32>,
    %c4_i32 = arith.constant 4 : i32
    %61 = arith.index_cast %c4_i32 : i32 to index
    %c0_38 = arith.constant 0 : index
    %c0_39 = arith.constant 0 : index
    %62 = vector.load %arg11[%61, %c0_38, %c0_39] : memref<8x16x128xf32, #tpu.memory_space<vmem>>, vector<1x16x128xf32>
    %63 = vector.shape_cast %62 : vector<1x16x128xf32> to vector<16x128xf32>
    %64 = arith.truncf %56 : vector<16x128xf32> to vector<16x128xbf16>
    %cst_40 = arith.constant dense<0.000000e+00> : vector<16x128xf32>
    %65 = tpu.matmul %64, %14, %cst_40 {dimension_numbers = #tpu.dot_dimension_numbers<[1], [0], [0], [1], [0, 0, 1, 1], [], []>} : vector<16x128xbf16>, vector<128x128xbf16>, vector<16x128xf32> -> vector<16x128xf32>
    %66 = arith.addf %63, %65 : vector<16x128xf32>
    %67 = math.tanh %66 : vector<16x128xf32>
    %68 = arith.index_cast %c4_i32 : i32 to index
    %c0_41 = arith.constant 0 : index
    %c0_42 = arith.constant 0 : index
    %69 = vector.load %arg11[%68, %c0_41, %c0_42] : memref<8x16x128xf32, #tpu.memory_space<vmem>>, vector<1x16x128xf32>
    %70 = vector.shape_cast %69 : vector<1x16x128xf32> to vector<16x128xf32>
    %71 = vector.shape_cast %67 : vector<16x128xf32> to vector<1x16x128xf32>
    tpu.vector_store %arg11[%68, %c0_41, %c0_42], %71 {strides = array<i32>} : memref<8x16x128xf32, #tpu.memory_space<vmem>>, vector<1x16x128xf32>,
    %c5_i32 = arith.constant 5 : i32
    %72 = arith.index_cast %c5_i32 : i32 to index
    %c0_43 = arith.constant 0 : index
    %c0_44 = arith.constant 0 : index
    %73 = vector.load %arg11[%72, %c0_43, %c0_44] : memref<8x16x128xf32, #tpu.memory_space<vmem>>, vector<1x16x128xf32>
    %74 = vector.shape_cast %73 : vector<1x16x128xf32> to vector<16x128xf32>
    %75 = arith.truncf %67 : vector<16x128xf32> to vector<16x128xbf16>
    %cst_45 = arith.constant dense<0.000000e+00> : vector<16x128xf32>
    %76 = tpu.matmul %75, %14, %cst_45 {dimension_numbers = #tpu.dot_dimension_numbers<[1], [0], [0], [1], [0, 0, 1, 1], [], []>} : vector<16x128xbf16>, vector<128x128xbf16>, vector<16x128xf32> -> vector<16x128xf32>
    %77 = arith.addf %74, %76 : vector<16x128xf32>
    %78 = math.tanh %77 : vector<16x128xf32>
    %79 = arith.index_cast %c5_i32 : i32 to index
    %c0_46 = arith.constant 0 : index
    %c0_47 = arith.constant 0 : index
    %80 = vector.load %arg11[%79, %c0_46, %c0_47] : memref<8x16x128xf32, #tpu.memory_space<vmem>>, vector<1x16x128xf32>
    %81 = vector.shape_cast %80 : vector<1x16x128xf32> to vector<16x128xf32>
    %82 = vector.shape_cast %78 : vector<16x128xf32> to vector<1x16x128xf32>
    tpu.vector_store %arg11[%79, %c0_46, %c0_47], %82 {strides = array<i32>} : memref<8x16x128xf32, #tpu.memory_space<vmem>>, vector<1x16x128xf32>,
    %c6_i32 = arith.constant 6 : i32
    %83 = arith.index_cast %c6_i32 : i32 to index
    %c0_48 = arith.constant 0 : index
    %c0_49 = arith.constant 0 : index
    %84 = vector.load %arg11[%83, %c0_48, %c0_49] : memref<8x16x128xf32, #tpu.memory_space<vmem>>, vector<1x16x128xf32>
    %85 = vector.shape_cast %84 : vector<1x16x128xf32> to vector<16x128xf32>
    %86 = arith.truncf %78 : vector<16x128xf32> to vector<16x128xbf16>
    %cst_50 = arith.constant dense<0.000000e+00> : vector<16x128xf32>
    %87 = tpu.matmul %86, %14, %cst_50 {dimension_numbers = #tpu.dot_dimension_numbers<[1], [0], [0], [1], [0, 0, 1, 1], [], []>} : vector<16x128xbf16>, vector<128x128xbf16>, vector<16x128xf32> -> vector<16x128xf32>
    %88 = arith.addf %85, %87 : vector<16x128xf32>
    %89 = math.tanh %88 : vector<16x128xf32>
    %90 = arith.index_cast %c6_i32 : i32 to index
    %c0_51 = arith.constant 0 : index
    %c0_52 = arith.constant 0 : index
    %91 = vector.load %arg11[%90, %c0_51, %c0_52] : memref<8x16x128xf32, #tpu.memory_space<vmem>>, vector<1x16x128xf32>
    %92 = vector.shape_cast %91 : vector<1x16x128xf32> to vector<16x128xf32>
    %93 = vector.shape_cast %89 : vector<16x128xf32> to vector<1x16x128xf32>
    tpu.vector_store %arg11[%90, %c0_51, %c0_52], %93 {strides = array<i32>} : memref<8x16x128xf32, #tpu.memory_space<vmem>>, vector<1x16x128xf32>,
    %c7_i32 = arith.constant 7 : i32
    %94 = arith.index_cast %c7_i32 : i32 to index
    %c0_53 = arith.constant 0 : index
    %c0_54 = arith.constant 0 : index
    %95 = vector.load %arg11[%94, %c0_53, %c0_54] : memref<8x16x128xf32, #tpu.memory_space<vmem>>, vector<1x16x128xf32>
    %96 = vector.shape_cast %95 : vector<1x16x128xf32> to vector<16x128xf32>
    %97 = arith.truncf %89 : vector<16x128xf32> to vector<16x128xbf16>
    %cst_55 = arith.constant dense<0.000000e+00> : vector<16x128xf32>
    %98 = tpu.matmul %97, %14, %cst_55 {dimension_numbers = #tpu.dot_dimension_numbers<[1], [0], [0], [1], [0, 0, 1, 1], [], []>} : vector<16x128xbf16>, vector<128x128xbf16>, vector<16x128xf32> -> vector<16x128xf32>
    %99 = arith.addf %96, %98 : vector<16x128xf32>
    %100 = math.tanh %99 : vector<16x128xf32>
    %101 = arith.index_cast %c7_i32 : i32 to index
    %c0_56 = arith.constant 0 : index
    %c0_57 = arith.constant 0 : index
    %102 = vector.load %arg11[%101, %c0_56, %c0_57] : memref<8x16x128xf32, #tpu.memory_space<vmem>>, vector<1x16x128xf32>
    %103 = vector.shape_cast %102 : vector<1x16x128xf32> to vector<16x128xf32>
    %104 = vector.shape_cast %100 : vector<16x128xf32> to vector<1x16x128xf32>
    tpu.vector_store %arg11[%101, %c0_56, %c0_57], %104 {strides = array<i32>} : memref<8x16x128xf32, #tpu.memory_space<vmem>>, vector<1x16x128xf32>,
    %c8_i32 = arith.constant 8 : i32
    %c0_58 = arith.constant 0 : index
    %c0_59 = arith.constant 0 : index
    %c0_60 = arith.constant 0 : index
    %105 = vector.load %arg10[%c0_58, %c0_59, %c0_60] : memref<2x16x128xf32, #tpu.memory_space<vmem>>, vector<1x16x128xf32>
    %106 = vector.shape_cast %105 : vector<1x16x128xf32> to vector<16x128xf32>
    %107 = vector.shape_cast %100 : vector<16x128xf32> to vector<1x16x128xf32>
    tpu.vector_store %arg10[%c0_58, %c0_59, %c0_60], %107 {strides = array<i32>} : memref<2x16x128xf32, #tpu.memory_space<vmem>>, vector<1x16x128xf32>,
    %c0_61 = arith.constant 0 : index
    %c0_62 = arith.constant 0 : index
    %c0_63 = arith.constant 0 : index
    %108 = vector.load %arg11[%c0_61, %c0_62, %c0_63] : memref<8x16x128xf32, #tpu.memory_space<vmem>>, vector<8x16x128xf32>
    %109 = vector.shape_cast %108 : vector<8x16x128xf32> to vector<128x128xf32>
    %110 = arith.truncf %109 : vector<128x128xf32> to vector<128x128xbf16>
    %c0_64 = arith.constant 0 : index
    %c0_65 = arith.constant 0 : index
    %c0_66 = arith.constant 0 : index
    %111 = vector.load %arg4[%c0_64, %c0_65, %c0_66] : memref<1x128x128xbf16, #tpu.memory_space<vmem>>, vector<1x128x128xbf16>
    %112 = vector.shape_cast %111 : vector<1x128x128xbf16> to vector<128x128xbf16>
    %cst_67 = arith.constant dense<0.000000e+00> : vector<128x128xf32>
    %113 = tpu.matmul %110, %112, %cst_67 {dimension_numbers = #tpu.dot_dimension_numbers<[1], [0], [0], [1], [0, 0, 1, 1], [], []>} : vector<128x128xbf16>, vector<128x128xbf16>, vector<128x128xf32> -> vector<128x128xf32>
    %c1 = arith.constant 1 : index
    %c0_68 = arith.constant 0 : index
    %c0_69 = arith.constant 0 : index
    %114 = vector.load %arg6[%c1, %c0_68, %c0_69] : memref<2x1x128xf32, #tpu.memory_space<vmem>>, vector<1x1x128xf32>
    %115 = vector.shape_cast %114 : vector<1x1x128xf32> to vector<1x128xf32>
    %116 = vector.broadcast %115 : vector<1x128xf32> to vector<128x128xf32>
    %117 = arith.addf %113, %116 : vector<128x128xf32>
    %118 = vector.shape_cast %117 : vector<128x128xf32> to vector<8x16x128xf32>
    %c0_70 = arith.constant 0 : index
    %c0_71 = arith.constant 0 : index
    %c0_72 = arith.constant 0 : index
    %119 = vector.load %arg11[%c0_70, %c0_71, %c0_72] : memref<8x16x128xf32, #tpu.memory_space<vmem>>, vector<8x16x128xf32>
    tpu.vector_store %arg11[%c0_70, %c0_71, %c0_72], %118 {strides = array<i32>} : memref<8x16x128xf32, #tpu.memory_space<vmem>>, vector<8x16x128xf32>,
    %c1_73 = arith.constant 1 : index
    %c0_74 = arith.constant 0 : index
    %c0_75 = arith.constant 0 : index
    %120 = vector.load %arg5[%c1_73, %c0_74, %c0_75] : memref<2x128x128xbf16, #tpu.memory_space<vmem>>, vector<1x128x128xbf16>
    %121 = vector.shape_cast %120 : vector<1x128x128xbf16> to vector<128x128xbf16>
    %c1_76 = arith.constant 1 : index
    %c0_77 = arith.constant 0 : index
    %c0_78 = arith.constant 0 : index
    %122 = vector.load %arg10[%c1_76, %c0_77, %c0_78] : memref<2x16x128xf32, #tpu.memory_space<vmem>>, vector<1x16x128xf32>
    %123 = vector.shape_cast %122 : vector<1x16x128xf32> to vector<16x128xf32>
    %c0_i32_79 = arith.constant 0 : i32
    %124 = arith.index_cast %c0_i32_79 : i32 to index
    %c0_80 = arith.constant 0 : index
    %c0_81 = arith.constant 0 : index
    %125 = vector.load %arg11[%124, %c0_80, %c0_81] : memref<8x16x128xf32, #tpu.memory_space<vmem>>, vector<1x16x128xf32>
    %126 = vector.shape_cast %125 : vector<1x16x128xf32> to vector<16x128xf32>
    %127 = arith.truncf %123 : vector<16x128xf32> to vector<16x128xbf16>
    %cst_82 = arith.constant dense<0.000000e+00> : vector<16x128xf32>
    %128 = tpu.matmul %127, %121, %cst_82 {dimension_numbers = #tpu.dot_dimension_numbers<[1], [0], [0], [1], [0, 0, 1, 1], [], []>} : vector<16x128xbf16>, vector<128x128xbf16>, vector<16x128xf32> -> vector<16x128xf32>
    %129 = arith.addf %126, %128 : vector<16x128xf32>
    %130 = math.tanh %129 : vector<16x128xf32>
    %c1_i32_83 = arith.constant 1 : i32
    %131 = arith.index_cast %c1_i32_83 : i32 to index
    %c0_84 = arith.constant 0 : index
    %c0_85 = arith.constant 0 : index
    %132 = vector.load %arg11[%131, %c0_84, %c0_85] : memref<8x16x128xf32, #tpu.memory_space<vmem>>, vector<1x16x128xf32>
    %133 = vector.shape_cast %132 : vector<1x16x128xf32> to vector<16x128xf32>
    %134 = arith.truncf %130 : vector<16x128xf32> to vector<16x128xbf16>
    %cst_86 = arith.constant dense<0.000000e+00> : vector<16x128xf32>
    %135 = tpu.matmul %134, %121, %cst_86 {dimension_numbers = #tpu.dot_dimension_numbers<[1], [0], [0], [1], [0, 0, 1, 1], [], []>} : vector<16x128xbf16>, vector<128x128xbf16>, vector<16x128xf32> -> vector<16x128xf32>
    %136 = arith.addf %133, %135 : vector<16x128xf32>
    %137 = math.tanh %136 : vector<16x128xf32>
    %c2_i32_87 = arith.constant 2 : i32
    %138 = arith.index_cast %c2_i32_87 : i32 to index
    %c0_88 = arith.constant 0 : index
    %c0_89 = arith.constant 0 : index
    %139 = vector.load %arg11[%138, %c0_88, %c0_89] : memref<8x16x128xf32, #tpu.memory_space<vmem>>, vector<1x16x128xf32>
    %140 = vector.shape_cast %139 : vector<1x16x128xf32> to vector<16x128xf32>
    %141 = arith.truncf %137 : vector<16x128xf32> to vector<16x128xbf16>
    %cst_90 = arith.constant dense<0.000000e+00> : vector<16x128xf32>
    %142 = tpu.matmul %141, %121, %cst_90 {dimension_numbers = #tpu.dot_dimension_numbers<[1], [0], [0], [1], [0, 0, 1, 1], [], []>} : vector<16x128xbf16>, vector<128x128xbf16>, vector<16x128xf32> -> vector<16x128xf32>
    %143 = arith.addf %140, %142 : vector<16x128xf32>
    %144 = math.tanh %143 : vector<16x128xf32>
    %c3_i32_91 = arith.constant 3 : i32
    %145 = arith.index_cast %c3_i32_91 : i32 to index
    %c0_92 = arith.constant 0 : index
    %c0_93 = arith.constant 0 : index
    %146 = vector.load %arg11[%145, %c0_92, %c0_93] : memref<8x16x128xf32, #tpu.memory_space<vmem>>, vector<1x16x128xf32>
    %147 = vector.shape_cast %146 : vector<1x16x128xf32> to vector<16x128xf32>
    %148 = arith.truncf %144 : vector<16x128xf32> to vector<16x128xbf16>
    %cst_94 = arith.constant dense<0.000000e+00> : vector<16x128xf32>
    %149 = tpu.matmul %148, %121, %cst_94 {dimension_numbers = #tpu.dot_dimension_numbers<[1], [0], [0], [1], [0, 0, 1, 1], [], []>} : vector<16x128xbf16>, vector<128x128xbf16>, vector<16x128xf32> -> vector<16x128xf32>
    %150 = arith.addf %147, %149 : vector<16x128xf32>
    %151 = math.tanh %150 : vector<16x128xf32>
    %c4_i32_95 = arith.constant 4 : i32
    %152 = arith.index_cast %c4_i32_95 : i32 to index
    %c0_96 = arith.constant 0 : index
    %c0_97 = arith.constant 0 : index
    %153 = vector.load %arg11[%152, %c0_96, %c0_97] : memref<8x16x128xf32, #tpu.memory_space<vmem>>, vector<1x16x128xf32>
    %154 = vector.shape_cast %153 : vector<1x16x128xf32> to vector<16x128xf32>
    %155 = arith.truncf %151 : vector<16x128xf32> to vector<16x128xbf16>
    %cst_98 = arith.constant dense<0.000000e+00> : vector<16x128xf32>
    %156 = tpu.matmul %155, %121, %cst_98 {dimension_numbers = #tpu.dot_dimension_numbers<[1], [0], [0], [1], [0, 0, 1, 1], [], []>} : vector<16x128xbf16>, vector<128x128xbf16>, vector<16x128xf32> -> vector<16x128xf32>
    %157 = arith.addf %154, %156 : vector<16x128xf32>
    %158 = math.tanh %157 : vector<16x128xf32>
    %c5_i32_99 = arith.constant 5 : i32
    %159 = arith.index_cast %c5_i32_99 : i32 to index
    %c0_100 = arith.constant 0 : index
    %c0_101 = arith.constant 0 : index
    %160 = vector.load %arg11[%159, %c0_100, %c0_101] : memref<8x16x128xf32, #tpu.memory_space<vmem>>, vector<1x16x128xf32>
    %161 = vector.shape_cast %160 : vector<1x16x128xf32> to vector<16x128xf32>
    %162 = arith.truncf %158 : vector<16x128xf32> to vector<16x128xbf16>
    %cst_102 = arith.constant dense<0.000000e+00> : vector<16x128xf32>
    %163 = tpu.matmul %162, %121, %cst_102 {dimension_numbers = #tpu.dot_dimension_numbers<[1], [0], [0], [1], [0, 0, 1, 1], [], []>} : vector<16x128xbf16>, vector<128x128xbf16>, vector<16x128xf32> -> vector<16x128xf32>
    %164 = arith.addf %161, %163 : vector<16x128xf32>
    %165 = math.tanh %164 : vector<16x128xf32>
    %c6_i32_103 = arith.constant 6 : i32
    %166 = arith.index_cast %c6_i32_103 : i32 to index
    %c0_104 = arith.constant 0 : index
    %c0_105 = arith.constant 0 : index
    %167 = vector.load %arg11[%166, %c0_104, %c0_105] : memref<8x16x128xf32, #tpu.memory_space<vmem>>, vector<1x16x128xf32>
    %168 = vector.shape_cast %167 : vector<1x16x128xf32> to vector<16x128xf32>
    %169 = arith.truncf %165 : vector<16x128xf32> to vector<16x128xbf16>
    %cst_106 = arith.constant dense<0.000000e+00> : vector<16x128xf32>
    %170 = tpu.matmul %169, %121, %cst_106 {dimension_numbers = #tpu.dot_dimension_numbers<[1], [0], [0], [1], [0, 0, 1, 1], [], []>} : vector<16x128xbf16>, vector<128x128xbf16>, vector<16x128xf32> -> vector<16x128xf32>
    %171 = arith.addf %168, %170 : vector<16x128xf32>
    %172 = math.tanh %171 : vector<16x128xf32>
    %c7_i32_107 = arith.constant 7 : i32
    %173 = arith.index_cast %c7_i32_107 : i32 to index
    %c0_108 = arith.constant 0 : index
    %c0_109 = arith.constant 0 : index
    %174 = vector.load %arg11[%173, %c0_108, %c0_109] : memref<8x16x128xf32, #tpu.memory_space<vmem>>, vector<1x16x128xf32>
    %175 = vector.shape_cast %174 : vector<1x16x128xf32> to vector<16x128xf32>
    %176 = arith.truncf %172 : vector<16x128xf32> to vector<16x128xbf16>
    %cst_110 = arith.constant dense<0.000000e+00> : vector<16x128xf32>
    %177 = tpu.matmul %176, %121, %cst_110 {dimension_numbers = #tpu.dot_dimension_numbers<[1], [0], [0], [1], [0, 0, 1, 1], [], []>} : vector<16x128xbf16>, vector<128x128xbf16>, vector<16x128xf32> -> vector<16x128xf32>
    %178 = arith.addf %175, %177 : vector<16x128xf32>
    %179 = math.tanh %178 : vector<16x128xf32>
    %c8_i32_111 = arith.constant 8 : i32
    %c1_112 = arith.constant 1 : index
    %c0_113 = arith.constant 0 : index
    %c0_114 = arith.constant 0 : index
    %180 = vector.load %arg10[%c1_112, %c0_113, %c0_114] : memref<2x16x128xf32, #tpu.memory_space<vmem>>, vector<1x16x128xf32>
    %181 = vector.shape_cast %180 : vector<1x16x128xf32> to vector<16x128xf32>
    %182 = vector.shape_cast %179 : vector<16x128xf32> to vector<1x16x128xf32>
    tpu.vector_store %arg10[%c1_112, %c0_113, %c0_114], %182 {strides = array<i32>} : memref<2x16x128xf32, #tpu.memory_space<vmem>>, vector<1x16x128xf32>,
    %c0_i32_115 = arith.constant 0 : i32
    %183 = arith.cmpi eq, %arg1, %c0_i32_115 : i32
    %184 = arith.extui %183 : i1 to i32
    %c0_i32_116 = arith.constant 0 : i32
    %185 = arith.cmpi ne, %184, %c0_i32_116 : i32
    scf.if %185 {
      %c1_117 = arith.constant 1 : index
      %c0_118 = arith.constant 0 : index
      %c0_119 = arith.constant 0 : index
      %186 = vector.load %arg10[%c1_117, %c0_118, %c0_119] : memref<2x16x128xf32, #tpu.memory_space<vmem>>, vector<1x16x128xf32>
      %187 = vector.shape_cast %186 : vector<1x16x128xf32> to vector<16x128xf32>
      %c0_120 = arith.constant 0 : index
      %c0_121 = arith.constant 0 : index
      %188 = vector.load %arg7[%c0_120, %c0_121] : memref<128x128xf32, #tpu.memory_space<vmem>>, vector<128x128xf32>
      %cst_122 = arith.constant dense<0.000000e+00> : vector<16x128xf32>
      %189 = tpu.matmul %187, %188, %cst_122 {dimension_numbers = #tpu.dot_dimension_numbers<[1], [0], [0], [1], [0, 0, 1, 1], [], []>} : vector<16x128xf32>, vector<128x128xf32>, vector<16x128xf32> -> vector<16x128xf32>
      %c0_123 = arith.constant 0 : index
      %c0_124 = arith.constant 0 : index
      %190 = vector.load %arg8[%c0_123, %c0_124] : memref<1x128xf32, #tpu.memory_space<vmem>>, vector<1x128xf32>
      %191 = vector.broadcast %190 : vector<1x128xf32> to vector<16x128xf32>
      %192 = arith.addf %189, %191 : vector<16x128xf32>
      %c0_125 = arith.constant 0 : index
      %c0_126 = arith.constant 0 : index
      %193 = vector.load %arg9[%c0_125, %c0_126] : memref<16x128xf32, #tpu.memory_space<vmem>>, vector<16x128xf32>
      tpu.vector_store %arg9[%c0_125, %c0_126], %192 {strides = array<i32>} : memref<16x128xf32, #tpu.memory_space<vmem>>, vector<16x128xf32>,
    } else {
    }
    return
  }
  func.func @transform_0(%arg0: i32, %arg1: i32) -> (i32, i32, i32) {
    %c0_i32 = arith.constant 0 : i32
    %c0_i32_0 = arith.constant 0 : i32
    return %arg1, %arg0, %c0_i32 : i32, i32, i32
  }
  func.func @transform_1(%arg0: i32, %arg1: i32) -> (i32, i32) {
    %c0_i32 = arith.constant 0 : i32
    %c0_i32_0 = arith.constant 0 : i32
    %c0_i32_1 = arith.constant 0 : i32
    return %c0_i32, %c0_i32_0 : i32, i32
  }
  func.func @transform_2(%arg0: i32, %arg1: i32) -> (i32, i32, i32) {
    %c0_i32 = arith.constant 0 : i32
    %c0_i32_0 = arith.constant 0 : i32
    %c0_i32_1 = arith.constant 0 : i32
    %c0_i32_2 = arith.constant 0 : i32
    return %c0_i32, %c0_i32_0, %c0_i32_1 : i32, i32, i32
  }
  func.func @transform_3(%arg0: i32, %arg1: i32) -> (i32, i32, i32) {
    %c0_i32 = arith.constant 0 : i32
    %c0_i32_0 = arith.constant 0 : i32
    %c0_i32_1 = arith.constant 0 : i32
    %c0_i32_2 = arith.constant 0 : i32
    return %c0_i32, %c0_i32_0, %c0_i32_1 : i32, i32, i32
  }
  func.func @transform_4(%arg0: i32, %arg1: i32) -> (i32, i32, i32) {
    %c0_i32 = arith.constant 0 : i32
    %c0_i32_0 = arith.constant 0 : i32
    %c0_i32_1 = arith.constant 0 : i32
    %c0_i32_2 = arith.constant 0 : i32
    return %c0_i32, %c0_i32_0, %c0_i32_1 : i32, i32, i32
  }
  func.func @transform_5(%arg0: i32, %arg1: i32) -> (i32, i32) {
    %c0_i32 = arith.constant 0 : i32
    %c0_i32_0 = arith.constant 0 : i32
    %c0_i32_1 = arith.constant 0 : i32
    return %c0_i32, %c0_i32_0 : i32, i32
  }
  func.func @transform_6(%arg0: i32, %arg1: i32) -> (i32, i32) {
    %c0_i32 = arith.constant 0 : i32
    %c0_i32_0 = arith.constant 0 : i32
    %c0_i32_1 = arith.constant 0 : i32
    return %c0_i32, %c0_i32_0 : i32, i32
  }
  func.func @transform_7(%arg0: i32, %arg1: i32) -> (i32, i32) {
    %c0_i32 = arith.constant 0 : i32
    %c0_i32_0 = arith.constant 0 : i32
    return %arg0, %c0_i32 : i32, i32
  }
}

</mosaic_0001>

<bundles_post_ra>
// kernel: rnn_forward.1
= control target key start
LH: loop header
LB: loop body
LE: loop exit
PB: predicated region body
PF: predicated region fallthrough
CT: control target
= control target key end

     0   :  { %12 = vsyncpa [#allocation5], 0  ;;  %s3054_s0 = inlined_call_operand.vmem [shape: bf16[8,16,128], index: 0, kind: input, shape index: {}]   ;;  %s3055_s1 = inlined_call_operand.vmem [shape: bf16[128,128], index: 1, kind: input, shape index: {}]   ;;  %s3056_s2 = inlined_call_operand.hbm [shape: bf16[1,128,128], index: 2, kind: input, shape index: {}]   ;;  %s3057_s3 = inlined_call_operand.hbm [shape: bf16[2,128,128], index: 3, kind: input, shape index: {}]   ;;  %s3058_s4 = inlined_call_operand.vmem [shape: f32[2,1,128], index: 4, kind: input, shape index: {}]   ;;  %s3059_s5 = inlined_call_operand.hbm [shape: f32[128,128], index: 5, kind: input, shape index: {}]   ;;  %s3060_s6 = inlined_call_operand.vmem [shape: f32[1,128], index: 6, kind: input, shape index: {}]   ;;  %s3061_s7 = inlined_call_operand.vmem [shape: f32[16,128], index: 7, kind: output, shape index: {}]  }
   0x1   :  { %13 = vsyncpa [#allocation7], 0  ;;  %s2446_s24 = smov [#allocation6]   ;;  %s2447_s26 = smov [#allocation4]  }
   0x2   :  { %s35_s25 = sshll.u32 %s2446_s24, 4  ;;  %s23_s27 = sshll.u32 %s2447_s26, 4  ;;  %s36_s25 = int_to_ptr.vmem [resolvable:$true] %s35_s25  ;;  %s2496_s27 = int_to_ptr.vmem [resolvable:$true] %s23_s27 }
   0x3   :  { %s2376_s30 = scalar_lea.hbm %s3057_s3, 2048 }
   0x4   :  { %p2377_p0 = scmp.ne.s32.totalorder %s3057_s3, %s2376_s30  ;;  %p2380_p1 = scmp.lt.u32.totalorder %s2376_s30, %s3057_s3 }
   0x6   :  { %p2382_p2 = pnand %p2380_p1, %p2377_p0 }
   0x8   :  { %2385 = shalt.err (!%p2382_p2)
}
   0x9   :  { %s2386_s12 = scalar_lea.vmem %s36_s25, 2048  ;;  %p2391_p4 = scmp.lt.s32.totalorder %s36_s25, %s36_s25 }
   0xa   :  { %p2387_p3 = scmp.ne.s32.totalorder %s36_s25, %s2386_s12  ;;  %p2392_p5 = scmp.lt.s32.totalorder %s2386_s12, %s2386_s12 }
   0xc   :  { %p2393_p6 = por %p2392_p5, %p2391_p4 }
   0xe   :  { %p2394_p7 = pnand %p2393_p6, %p2387_p3 }
  0x10   :  { %2397 = shalt.err (!%p2394_p7)
}
  0x11   :  { %s2448_s13 = smov 64   ;;  %s2449_s14 = smov 4  }
  0x12   :  { %41 = dma.hbm_to_vmem [thread:$0]  %s3057_s3, 2048, %s36_s25, [#allocation7], %s2448_s13, %s2448_s13, %s2449_s14  }
  0x13   :  { %s2398_s19 = scalar_lea.hbm %s3056_s2, 1024 }
  0x14   :  { %p2399_p8 = scmp.ne.s32.totalorder %s3056_s2, %s2398_s19  ;;  %p2402_p9 = scmp.lt.u32.totalorder %s2398_s19, %s3056_s2 }
  0x16   :  { %p2404_p10 = pnand %p2402_p9, %p2399_p8 }
  0x18   :  { %2407 = shalt.err (!%p2404_p10)
}
  0x19   :  { %s2408_s24 = scalar_lea.vmem %s2496_s27, 1024  ;;  %p2413_p12 = scmp.lt.s32.totalorder %s2496_s27, %s2496_s27 }
  0x1a   :  { %p2409_p11 = scmp.ne.s32.totalorder %s2496_s27, %s2408_s24  ;;  %p2414_p13 = scmp.lt.s32.totalorder %s2408_s24, %s2408_s24 }
  0x1c   :  { %p2415_p0 = por %p2414_p13, %p2413_p12 }
  0x1e   :  { %p2416_p1 = pnand %p2415_p0, %p2409_p11 }
  0x20   :  { %2419 = shalt.err (!%p2416_p1)
}
  0x21   :  { %29 = dma.hbm_to_vmem [thread:$0]  %s3056_s2, 1024, %s2496_s27, [#allocation5], %s2448_s13, %s2448_s13, %s2449_s14  }
  0x22   :  { %s2450_s26 = smov [#allocation8]   ;;  %s2420_s8 = scalar_lea.hbm %s3059_s5, 2048 }
  0x23   :  { %s49_s28 = sshll.u32 %s2450_s26, 4  ;;  %p2421_p2 = scmp.ne.s32.totalorder %s3059_s5, %s2420_s8  ;;  %s50_s28 = int_to_ptr.vmem [resolvable:$true] %s49_s28 }
  0x24   :  { %p2424_p3 = scmp.lt.u32.totalorder %s2420_s8, %s3059_s5 }
  0x26   :  { %p2426_p4 = pnand %p2424_p3, %p2421_p2 }
  0x28   :  { %2429 = shalt.err (!%p2426_p4)
}
  0x29   :  { %s2430_s15 = scalar_lea.vmem %s50_s28, 2048  ;;  %p2435_p6 = scmp.lt.s32.totalorder %s50_s28, %s50_s28 }
  0x2a   :  { %p2431_p5 = scmp.ne.s32.totalorder %s50_s28, %s2430_s15  ;;  %p2436_p7 = scmp.lt.s32.totalorder %s2430_s15, %s2430_s15 }
  0x2c   :  { %p2437_p8 = por %p2436_p7, %p2435_p6 }
  0x2e   :  { %p2438_p9 = pnand %p2437_p8, %p2431_p5 }
  0x30   :  { %2441 = shalt.err (!%p2438_p9)
}
  0x31   :  { %s2451_s2 = smov 128   ;;  %s2452_s27 = smov 8  }
  0x32   :  { %55 = dma.hbm_to_vmem [thread:$0]  %s3059_s5, 2048, %s50_s28, [#allocation7], %s2451_s2, %s2451_s2, %s2452_s27  }
  0x33   :  { %2442 = dma.done.wait [#allocation5], 1024  }
  0x34   :  { %2443 = vsyncadd [#allocation5], 4294966272 }
  0x35   :  { %2444 = dma.done.wait [#allocation7], 4096  }
  0x36   :  { %2445 = vsyncadd [#allocation7], 4294963200  ;;  %v2453_v0 = vmov 0.0   ;;  %vm2454_vm0 = vmmov 0   ;;  %v2272_v1 = vld [vmem:[%s3055_s1] sm:$0xff]   ;;  %v2274_v3 = vld [vmem:[%s3055_s1 + $0x8] sm:$0xff]  }
  0x37   :  { %1843 = vmatprep.subr.bf16.mxu1 %v2453_v0  ;;  %1859 = vmatprep.mubr.msk.bf16.mxu1 %vm2454_vm0, %v2453_v0  ;;  %v2545_v2 = vld [vmem:[#allocation6] sm:$0xff]   ;;  %v2551_v4 = vld [vmem:[#allocation6 + $0x8] sm:$0xff]   ;;  %v2276_v5 = vld [vmem:[%s3055_s1 + $0x10] sm:$0xff]   ;;  %v2455_v20 = vmov 0.0|0.0  }
  0x38   :  { %1811 = vmatprep.subr.bf16.mxu0 %v2272_v1  ;;  %1844 = vmatpush3.bf16.msra.mxu1 %v2545_v2  ;;  %v2558_v6 = vld [vmem:[#allocation6 + $0x10] sm:$0xff]   ;;  %v2278_v7 = vld [vmem:[%s3055_s1 + $0x18] sm:$0xff]   ;;  %v2280_v9 = vld [vmem:[%s3055_s1 + $0x20] sm:$0xff]  }
  0x39   :  { %1812 = vmatpush3.bf16.msra.mxu0 %v2272_v1  ;;  %1845 = vmatprep.subr.bf16.mxu1 %v2453_v0  ;;  %v2565_v8 = vld [vmem:[#allocation6 + $0x18] sm:$0xff]   ;;  %v2571_v10 = vld [vmem:[#allocation6 + $0x20] sm:$0xff]   ;;  %v2282_v11 = vld [vmem:[%s3055_s1 + $0x28] sm:$0xff]  }
  0x3a   :  { %1813 = vmatprep.subr.bf16.mxu0 %v2274_v3  ;;  %v2288_v12 = vld [vmem:[%s3054_s0] sm:$0xff]   ;;  %v2581_v13 = vld [vmem:[#allocation6 + $0x28] sm:$0xff]   ;;  %v2284_v14 = vld [vmem:[%s3055_s1 + $0x30] sm:$0xff]  }
  0x3b   :  { %1827 = vmatprep.mubr.bf16.mxu0 %v2288_v12  ;;  %v2588_v15 = vld [vmem:[#allocation6 + $0x30] sm:$0xff]   ;;  %v2286_v16 = vld [vmem:[%s3055_s1 + $0x38] sm:$0xff]   ;;  %v2289_v18 = vld [vmem:[%s3054_s0 + $0x8] sm:$0xff]  }
  0x3c   :  { %1846 = vmatpush3.bf16.msra.mxu1 %v2551_v4  ;;  %v2595_v17 = vld [vmem:[#allocation6 + $0x38] sm:$0xff]   ;;  %v2290_v19 = vld [vmem:[%s3054_s0 + $0x10] sm:$0xff]   ;;  %v2292_v22 = vld [vmem:[%s3054_s0 + $0x20] sm:$0xff]  }
  0x3d   :  { %1814 = vmatpush3.bf16.msra.mxu0 %v2274_v3  ;;  %1847 = vmatprep.subr.bf16.mxu1 %v2453_v0  ;;  %v2291_v21 = vld [vmem:[%s3054_s0 + $0x18] sm:$0xff]   ;;  %v2293_v23 = vld [vmem:[%s3054_s0 + $0x28] sm:$0xff]   ;;  %v2294_v24 = vld [vmem:[%s3054_s0 + $0x30] sm:$0xff]  }
  0x3e   :  { %1815 = vmatprep.subr.bf16.mxu0 %v2276_v5  ;;  %v2295_v25 = vld [vmem:[%s3054_s0 + $0x38] sm:$0xff]   ;;  %v2663_v26 = vld [vmem:[%s3058_s4] ss:$0 sm:$0xff] }
  0x40   :  { %1848 = vmatpush3.bf16.msra.mxu1 %v2558_v6 }
  0x41   :  { %1816 = vmatpush3.bf16.msra.mxu0 %v2276_v5  ;;  %1849 = vmatprep.subr.bf16.mxu1 %v2453_v0 }
  0x42   :  { %1817 = vmatprep.subr.bf16.mxu0 %v2278_v7 }
  0x44   :  { %1850 = vmatpush3.bf16.msra.mxu1 %v2565_v8 }
  0x45   :  { %1818 = vmatpush3.bf16.msra.mxu0 %v2278_v7  ;;  %1851 = vmatprep.subr.bf16.mxu1 %v2453_v0 }
  0x46   :  { %1819 = vmatprep.subr.bf16.mxu0 %v2280_v9 }
  0x48   :  { %1852 = vmatpush3.bf16.msra.mxu1 %v2571_v10 }
  0x49   :  { %1820 = vmatpush3.bf16.msra.mxu0 %v2280_v9  ;;  %1853 = vmatprep.subr.bf16.mxu1 %v2453_v0 }
  0x4a   :  { %1821 = vmatprep.subr.bf16.mxu0 %v2282_v11 }
  0x4c   :  { %1854 = vmatpush3.bf16.msra.mxu1 %v2581_v13 }
  0x4d   :  { %1822 = vmatpush3.bf16.msra.mxu0 %v2282_v11  ;;  %1855 = vmatprep.subr.bf16.mxu1 %v2453_v0 }
  0x4e   :  { %1823 = vmatprep.subr.bf16.mxu0 %v2284_v14 }
  0x50   :  { %1856 = vmatpush3.bf16.msra.mxu1 %v2588_v15 }
  0x51   :  { %1824 = vmatpush3.bf16.msra.mxu0 %v2284_v14  ;;  %1857 = vmatprep.subr.bf16.mxu1 %v2453_v0 }
  0x52   :  { %1825 = vmatprep.subr.bf16.mxu0 %v2286_v16 }
  0x54   :  { %1858 = vmatpush3.bf16.msra.mxu1 %v2595_v17 }
  0x55   :  { %1826 = vmatpush3.bf16.msra.mxu0 %v2286_v16  ;;  %1883 = vmatprep.subr.bf16.mxu1 %v2453_v0 }
  0x56   :  { %1863 = vmatprep.subr.bf16.mxu0 %v2453_v0 }
  0x57   :  { %1860 = vmatmul.mubr.bf16.vlgmr.msra.gmra.mrb[0].mxu1 %v2455_v20 }
  0x58   :  { %1828 = vmatmul.mubr.bf16.vlgmr.msra.gmra.mrb[0].mxu0 %v2289_v18  ;;  %1884 = vmatpush3.bf16.msra.mxu1 %v2545_v2 }
  0x59   :  { %1864 = vmatpush3.bf16.msra.mxu0 %v2545_v2  ;;  %1831 = vmatprep.mubr.bf16.mxu0 %v2290_v19 }
  0x5a   :  { %1865 = vmatprep.subr.bf16.mxu0 %v2453_v0  ;;  %1885 = vmatprep.subr.bf16.mxu1 %v2453_v0 }
  0x5b   :  { %1899 = vmatprep.mubr.msk.bf16.mxu1 %vm2454_vm0, %v2453_v0 }
  0x5c   :  { %1886 = vmatpush3.bf16.msra.mxu1 %v2551_v4 }
  0x5d   :  { %1866 = vmatpush3.bf16.msra.mxu0 %v2551_v4  ;;  %1887 = vmatprep.subr.bf16.mxu1 %v2453_v0 }
  0x5e   :  { %1867 = vmatprep.subr.bf16.mxu0 %v2453_v0 }
  0x60   :  { %1832 = vmatmul.mubr.bf16.gmra.mrb[4].mxu0 %v2291_v21  ;;  %1888 = vmatpush3.bf16.msra.mxu1 %v2558_v6 }
  0x61   :  { %1868 = vmatpush3.bf16.msra.mxu0 %v2558_v6  ;;  %1889 = vmatprep.subr.bf16.mxu1 %v2453_v0 }
  0x62   :  { %1869 = vmatprep.subr.bf16.mxu0 %v2453_v0  ;;  %1835 = vmatprep.mubr.bf16.mxu0 %v2292_v22 }
  0x64   :  { %1890 = vmatpush3.bf16.msra.mxu1 %v2565_v8 }
  0x65   :  { %1870 = vmatpush3.bf16.msra.mxu0 %v2565_v8  ;;  %1891 = vmatprep.subr.bf16.mxu1 %v2453_v0 }
  0x66   :  { %1871 = vmatprep.subr.bf16.mxu0 %v2453_v0 }
  0x68   :  { %1892 = vmatpush3.bf16.msra.mxu1 %v2571_v10  ;;  %1836 = vmatmul.mubr.bf16.gmra.mrb[8].mxu0 %v2293_v23 }
  0x69   :  { %1872 = vmatpush3.bf16.msra.mxu0 %v2571_v10  ;;  %1893 = vmatprep.subr.bf16.mxu1 %v2453_v0 }
  0x6a   :  { %1873 = vmatprep.subr.bf16.mxu0 %v2453_v0  ;;  %1839 = vmatprep.mubr.bf16.mxu0 %v2294_v24 }
  0x6c   :  { %1894 = vmatpush3.bf16.msra.mxu1 %v2581_v13 }
  0x6d   :  { %1874 = vmatpush3.bf16.msra.mxu0 %v2581_v13  ;;  %1895 = vmatprep.subr.bf16.mxu1 %v2453_v0 }
  0x6e   :  { %1875 = vmatprep.subr.bf16.mxu0 %v2453_v0 }
  0x70   :  { %1896 = vmatpush3.bf16.msra.mxu1 %v2588_v15  ;;  %1840 = vmatmul.mubr.bf16.gmra.mrb[12].mxu0 %v2295_v25 }
  0x71   :  { %1876 = vmatpush3.bf16.msra.mxu0 %v2588_v15  ;;  %1897 = vmatprep.subr.bf16.mxu1 %v2453_v0 }
  0x72   :  { %1877 = vmatprep.subr.bf16.mxu0 %v2453_v0  ;;  %1879 = vmatprep.mubr.msk.bf16.mxu0 %vm2454_vm0, %v2453_v0 }
  0x74   :  { %1898 = vmatpush3.bf16.msra.mxu1 %v2595_v17 }
  0x75   :  { %1878 = vmatpush3.bf16.msra.mxu0 %v2595_v17  ;;  %1923 = vmatprep.subr.bf16.mxu1 %v2453_v0 }
  0x76   :  { %1903 = vmatprep.subr.bf16.mxu0 %v2453_v0 }
 0x12a   :  { %v427_v28 = vpop.f32.mrb[0].mxu1 }
 0x12b   :  { %v1829_v27 = vpop.f32.mrb[0].mxu0  ;;  %v1861_v30 = vpop.f32.mrb[1].mxu1 }
 0x12c   :  { %v245_v29 = vpop.f32.mrb[1].mxu0  ;;  %v430_v33 = vpop.f32.mrb[2].mxu1  ;;  %v254_v54 = vadd.f32 %v1829_v27, %v2663_v26 }
 0x12d   :  { %v246_v31 = vadd.f32 %v2663_v26, %v245_v29  ;;  %v1830_v32 = vpop.f32.mrb[2].mxu0  ;;  %v1862_v35 = vpop.f32.mrb[3].mxu1 }
 0x12e   :  { %v248_v34 = vpop.f32.mrb[3].mxu0  ;;  %v257_v56 = vadd.f32 %v1830_v32, %v2663_v26 }
 0x12f   :  { %v434_v36 = vadd.f32 %v427_v28, %v246_v31  ;;  %v249_v37 = vadd.f32 %v2663_v26, %v248_v34 }
 0x131   :  { %v435_v38 = vadd.f32 %v430_v33, %v249_v37  ;;  %2312 = vtanh.f32 %v434_v36 }
 0x133   :  { %2314 = vtanh.f32 %v435_v38  ;;  %v2667_v39 = vpop.f32.mrb[4].mxu0 }
 0x134   :  { %v2669_v40 = vpop.f32.mrb[5].mxu0  ;;  %v270_v22 = vadd.f32 %v2667_v39, %v2663_v26 }
 0x135   :  { %v2671_v41 = vpop.f32.mrb[6].mxu0  ;;  %v262_v3 = vadd.f32 %v2663_v26, %v2669_v40 }
 0x136   :  { %v2673_v42 = vpop.f32.mrb[7].mxu0  ;;  %v273_v24 = vadd.f32 %v2671_v41, %v2663_v26 }
 0x137   :  { %v265_v7 = vadd.f32 %v2663_v26, %v2673_v42 }
 0x13b   :  { %v2313_v43 = vpop.eup %2312  ;;  %v2696_v46 = vpop.f32.mrb[8].mxu0 }
 0x13c   :  { %v2698_v47 = vpop.f32.mrb[9].mxu0 }
 0x13d   :  { %v2315_v44 = vpop.eup %2314  ;;  %v2700_v48 = vpop.f32.mrb[10].mxu0  ;;  %v278_v34 = vadd.f32 %v2663_v26, %v2698_v47 }
 0x13e   :  { %v2675_v45 = vpack.c.bf16 %v2315_v44, %v2313_v43  ;;  %v2702_v49 = vpop.f32.mrb[11].mxu0 }
 0x13f   :  { %v281_v36 = vadd.f32 %v2663_v26, %v2702_v49 }
 0x140   :  { %1880 = vmatmul.mubr.bf16.vlgmr.msra.gmra.mrb[16].mxu0 %v2675_v45 }
 0x141   :  { %1904 = vmatpush3.bf16.msra.mxu0 %v2545_v2  ;;  %1919 = vmatprep.mubr.msk.bf16.mxu0 %vm2454_vm0, %v2453_v0 }
 0x142   :  { %1905 = vmatprep.subr.bf16.mxu0 %v2453_v0 }
 0x143   :  { %v2704_v50 = vpop.f32.mrb[12].mxu0 }
 0x144   :  { %v2706_v51 = vpop.f32.mrb[13].mxu0 }
 0x145   :  { %1906 = vmatpush3.bf16.msra.mxu0 %v2551_v4  ;;  %v2708_v52 = vpop.f32.mrb[14].mxu0 }
 0x146   :  { %1907 = vmatprep.subr.bf16.mxu0 %v2453_v0  ;;  %v2710_v53 = vpop.f32.mrb[15].mxu0 }
 0x149   :  { %1908 = vmatpush3.bf16.msra.mxu0 %v2558_v6 }
 0x14a   :  { %1909 = vmatprep.subr.bf16.mxu0 %v2453_v0 }
 0x14d   :  { %1910 = vmatpush3.bf16.msra.mxu0 %v2565_v8 }
 0x14e   :  { %1911 = vmatprep.subr.bf16.mxu0 %v2453_v0 }
 0x151   :  { %1912 = vmatpush3.bf16.msra.mxu0 %v2571_v10 }
 0x152   :  { %1913 = vmatprep.subr.bf16.mxu0 %v2453_v0 }
 0x155   :  { %1914 = vmatpush3.bf16.msra.mxu0 %v2581_v13 }
 0x156   :  { %1915 = vmatprep.subr.bf16.mxu0 %v2453_v0 }
 0x159   :  { %1916 = vmatpush3.bf16.msra.mxu0 %v2588_v15 }
 0x15a   :  { %1917 = vmatprep.subr.bf16.mxu0 %v2453_v0 }
 0x15d   :  { %1918 = vmatpush3.bf16.msra.mxu0 %v2595_v17 }
 0x15e   :  { %1943 = vmatprep.subr.bf16.mxu0 %v2453_v0 }
 0x213   :  { %v478_v55 = vpop.f32.mrb[16].mxu0 }
 0x214   :  { %v485_v57 = vadd.f32 %v478_v55, %v254_v54  ;;  %v1881_v58 = vpop.f32.mrb[17].mxu0 }
 0x215   :  { %v481_v59 = vpop.f32.mrb[18].mxu0  ;;  %v2301_v58 = vld [vmem:[#allocation4 + $0x28] sm:$0xff]  }
 0x216   :  { %v486_v60 = vadd.f32 %v481_v59, %v257_v56  ;;  %v1882_v61 = vpop.f32.mrb[19].mxu0  ;;  %2316 = vtanh.f32 %v485_v57  ;;  %v2297_v56 = vld [vmem:[#allocation4 + $0x8] sm:$0xff]   ;;  %v2300_v57 = vld [vmem:[#allocation4 + $0x20] sm:$0xff]   ;;  %v2302_v59 = vld [vmem:[#allocation4 + $0x30] sm:$0xff]  }
 0x217   :  { %v2819_v61 = vld [vmem:[#allocation6 + $0x48] sm:$0xff]  }
 0x218   :  { %2318 = vtanh.f32 %v486_v60  ;;  %v2303_v60 = vld [vmem:[#allocation4 + $0x38] sm:$0xff]  }
 0x220   :  { %v2317_v62 = vpop.eup %2316 }
 0x222   :  { %v2319_v63 = vpop.eup %2318 }
 0x223   :  { %v2714_v1 = vpack.c.bf16 %v2319_v63, %v2317_v62  ;;  %v2823_v62 = vld [vmem:[#allocation6 + $0x50] sm:$0xff]   ;;  %v2827_v63 = vld [vmem:[#allocation6 + $0x58] sm:$0xff]  }
 0x225   :  { %1900 = vmatmul.mubr.bf16.vlgmr.msra.gmra.mrb[4].mxu1 %v2714_v1 }
 0x226   :  { %1924 = vmatpush3.bf16.msra.mxu1 %v2545_v2  ;;  %1939 = vmatprep.mubr.msk.bf16.mxu1 %vm2454_vm0, %v2453_v0 }
 0x227   :  { %1925 = vmatprep.subr.bf16.mxu1 %v2453_v0 }
 0x22a   :  { %1926 = vmatpush3.bf16.msra.mxu1 %v2551_v4 }
 0x22b   :  { %1927 = vmatprep.subr.bf16.mxu1 %v2453_v0 }
 0x22e   :  { %1928 = vmatpush3.bf16.msra.mxu1 %v2558_v6 }
 0x22f   :  { %1929 = vmatprep.subr.bf16.mxu1 %v2453_v0 }
 0x232   :  { %1930 = vmatpush3.bf16.msra.mxu1 %v2565_v8 }
 0x233   :  { %1931 = vmatprep.subr.bf16.mxu1 %v2453_v0 }
 0x236   :  { %1932 = vmatpush3.bf16.msra.mxu1 %v2571_v10 }
 0x237   :  { %1933 = vmatprep.subr.bf16.mxu1 %v2453_v0 }
 0x23a   :  { %1934 = vmatpush3.bf16.msra.mxu1 %v2581_v13 }
 0x23b   :  { %1935 = vmatprep.subr.bf16.mxu1 %v2453_v0 }
 0x23e   :  { %1936 = vmatpush3.bf16.msra.mxu1 %v2588_v15 }
 0x23f   :  { %1937 = vmatprep.subr.bf16.mxu1 %v2453_v0 }
 0x242   :  { %1938 = vmatpush3.bf16.msra.mxu1 %v2595_v17 }
 0x243   :  { %1963 = vmatprep.subr.bf16.mxu1 %v2453_v0 }
 0x2f8   :  { %v529_v5 = vpop.f32.mrb[4].mxu1 }
 0x2f9   :  { %v536_v9 = vadd.f32 %v529_v5, %v262_v3  ;;  %v1901_v11 = vpop.f32.mrb[5].mxu1  ;;  %v2835_v3 = vld [vmem:[#allocation6 + $0x68] sm:$0xff]   ;;  %v2839_v5 = vld [vmem:[#allocation6 + $0x70] sm:$0xff]  }
 0x2fa   :  { %v532_v12 = vpop.f32.mrb[6].mxu1 }
 0x2fb   :  { %v537_v14 = vadd.f32 %v532_v12, %v265_v7  ;;  %v1902_v16 = vpop.f32.mrb[7].mxu1  ;;  %2320 = vtanh.f32 %v536_v9  ;;  %v2843_v7 = vld [vmem:[#allocation6 + $0x78] sm:$0xff]   ;;  %v294_v9 = vadd.f32 %v2663_v26, %v2706_v51  ;;  %v297_v12 = vadd.f32 %v2663_v26, %v2710_v53 }
 0x2fd   :  { %2322 = vtanh.f32 %v537_v14 }
 0x305   :  { %v2321_v18 = vpop.eup %2320 }
 0x307   :  { %v2323_v19 = vpop.eup %2322 }
 0x308   :  { %v2739_v21 = vpack.c.bf16 %v2323_v19, %v2321_v18 }
 0x30a   :  { %1920 = vmatmul.mubr.bf16.vlgmr.msra.gmra.mrb[20].mxu0 %v2739_v21 }
 0x30b   :  { %1944 = vmatpush3.bf16.msra.mxu0 %v2545_v2  ;;  %1959 = vmatprep.mubr.msk.bf16.mxu0 %vm2454_vm0, %v2453_v0 }
 0x30c   :  { %1945 = vmatprep.subr.bf16.mxu0 %v2453_v0 }
 0x30f   :  { %1946 = vmatpush3.bf16.msra.mxu0 %v2551_v4 }
 0x310   :  { %1947 = vmatprep.subr.bf16.mxu0 %v2453_v0 }
 0x313   :  { %1948 = vmatpush3.bf16.msra.mxu0 %v2558_v6 }
 0x314   :  { %1949 = vmatprep.subr.bf16.mxu0 %v2453_v0 }
 0x317   :  { %1950 = vmatpush3.bf16.msra.mxu0 %v2565_v8 }
 0x318   :  { %1951 = vmatprep.subr.bf16.mxu0 %v2453_v0 }
 0x31b   :  { %1952 = vmatpush3.bf16.msra.mxu0 %v2571_v10 }
 0x31c   :  { %1953 = vmatprep.subr.bf16.mxu0 %v2453_v0 }
 0x31f   :  { %1954 = vmatpush3.bf16.msra.mxu0 %v2581_v13 }
 0x320   :  { %1955 = vmatprep.subr.bf16.mxu0 %v2453_v0 }
 0x323   :  { %1956 = vmatpush3.bf16.msra.mxu0 %v2588_v15 }
 0x324   :  { %1957 = vmatprep.subr.bf16.mxu0 %v2453_v0 }
 0x327   :  { %1958 = vmatpush3.bf16.msra.mxu0 %v2595_v17 }
 0x328   :  { %1983 = vmatprep.subr.bf16.mxu0 %v2453_v0 }
 0x3dd   :  { %v580_v23 = vpop.f32.mrb[20].mxu0 }
 0x3de   :  { %v587_v25 = vadd.f32 %v580_v23, %v270_v22  ;;  %v1921_v27 = vpop.f32.mrb[21].mxu0 }
 0x3df   :  { %v583_v28 = vpop.f32.mrb[22].mxu0 }
 0x3e0   :  { %v588_v29 = vadd.f32 %v583_v28, %v273_v24  ;;  %v1922_v30 = vpop.f32.mrb[23].mxu0  ;;  %2324 = vtanh.f32 %v587_v25 }
 0x3e2   :  { %2326 = vtanh.f32 %v588_v29 }
 0x3ea   :  { %v2325_v31 = vpop.eup %2324 }
 0x3ec   :  { %v2327_v32 = vpop.eup %2326 }
 0x3ed   :  { %v2764_v33 = vpack.c.bf16 %v2327_v32, %v2325_v31 }
 0x3ef   :  { %1940 = vmatmul.mubr.bf16.vlgmr.msra.gmra.mrb[8].mxu1 %v2764_v33 }
 0x3f0   :  { %1964 = vmatpush3.bf16.msra.mxu1 %v2545_v2  ;;  %1979 = vmatprep.mubr.msk.bf16.mxu1 %vm2454_vm0, %v2453_v0 }
 0x3f1   :  { %1965 = vmatprep.subr.bf16.mxu1 %v2453_v0 }
 0x3f4   :  { %1966 = vmatpush3.bf16.msra.mxu1 %v2551_v4 }
 0x3f5   :  { %1967 = vmatprep.subr.bf16.mxu1 %v2453_v0 }
 0x3f8   :  { %1968 = vmatpush3.bf16.msra.mxu1 %v2558_v6 }
 0x3f9   :  { %1969 = vmatprep.subr.bf16.mxu1 %v2453_v0 }
 0x3fc   :  { %1970 = vmatpush3.bf16.msra.mxu1 %v2565_v8 }
 0x3fd   :  { %1971 = vmatprep.subr.bf16.mxu1 %v2453_v0 }
 0x400   :  { %1972 = vmatpush3.bf16.msra.mxu1 %v2571_v10 }
 0x401   :  { %1973 = vmatprep.subr.bf16.mxu1 %v2453_v0 }
 0x404   :  { %1974 = vmatpush3.bf16.msra.mxu1 %v2581_v13 }
 0x405   :  { %1975 = vmatprep.subr.bf16.mxu1 %v2453_v0 }
 0x408   :  { %1976 = vmatpush3.bf16.msra.mxu1 %v2588_v15 }
 0x409   :  { %1977 = vmatprep.subr.bf16.mxu1 %v2453_v0 }
 0x40c   :  { %1978 = vmatpush3.bf16.msra.mxu1 %v2595_v17 }
 0x4c2   :  { %v631_v35 = vpop.f32.mrb[8].mxu1 }
 0x4c3   :  { %v638_v37 = vadd.f32 %v631_v35, %v278_v34  ;;  %v1941_v38 = vpop.f32.mrb[9].mxu1 }
 0x4c4   :  { %v634_v39 = vpop.f32.mrb[10].mxu1 }
 0x4c5   :  { %v639_v40 = vadd.f32 %v634_v39, %v281_v36  ;;  %v1942_v41 = vpop.f32.mrb[11].mxu1  ;;  %2328 = vtanh.f32 %v638_v37  ;;  %v305_v37 = vadd.f32 %v2708_v52, %v2663_v26 }
 0x4c7   :  { %2330 = vtanh.f32 %v639_v40 }
 0x4cf   :  { %v2329_v42 = vpop.eup %2328 }
 0x4d1   :  { %v2331_v43 = vpop.eup %2330 }
 0x4d2   :  { %v647_v44 = vpack.c.bf16 %v2331_v43, %v2329_v42 }
 0x4d4   :  { %1960 = vmatmul.mubr.bf16.vlgmr.msra.gmra.mrb[24].mxu0 %v647_v44 }
 0x4d5   :  { %1984 = vmatpush3.bf16.msra.mxu0 %v2545_v2  ;;  %1999 = vmatprep.mubr.msk.bf16.mxu0 %vm2454_vm0, %v2453_v0  ;;  %v2296_v2 = vld [vmem:[#allocation4] sm:$0xff]  }
 0x4d6   :  { %1985 = vmatprep.subr.bf16.mxu0 %v2453_v0  ;;  %2003 = vmatprep.subr.bf16.mxu1 %v2296_v2 }
 0x4d9   :  { %1986 = vmatpush3.bf16.msra.mxu0 %v2551_v4  ;;  %v286_v4 = vadd.f32 %v2696_v46, %v2663_v26  ;;  %v2298_v46 = vld [vmem:[#allocation4 + $0x10] sm:$0xff]  }
 0x4da   :  { %1987 = vmatprep.subr.bf16.mxu0 %v2453_v0 }
 0x4dd   :  { %1988 = vmatpush3.bf16.msra.mxu0 %v2558_v6 }
 0x4de   :  { %1989 = vmatprep.subr.bf16.mxu0 %v2453_v0 }
 0x4e1   :  { %1990 = vmatpush3.bf16.msra.mxu0 %v2565_v8  ;;  %v289_v8 = vadd.f32 %v2700_v48, %v2663_v26  ;;  %v2299_v48 = vld [vmem:[#allocation4 + $0x18] sm:$0xff]  }
 0x4e2   :  { %1991 = vmatprep.subr.bf16.mxu0 %v2453_v0 }
 0x4e5   :  { %1992 = vmatpush3.bf16.msra.mxu0 %v2571_v10 }
 0x4e6   :  { %1993 = vmatprep.subr.bf16.mxu0 %v2453_v0 }
 0x4e9   :  { %1994 = vmatpush3.bf16.msra.mxu0 %v2581_v13 }
 0x4ea   :  { %1995 = vmatprep.subr.bf16.mxu0 %v2453_v0 }
 0x4ed   :  { %1996 = vmatpush3.bf16.msra.mxu0 %v2588_v15 }
 0x4ee   :  { %1997 = vmatprep.subr.bf16.mxu0 %v2453_v0 }
 0x4f1   :  { %1998 = vmatpush3.bf16.msra.mxu0 %v2595_v17 }
 0x4f2   :  { %2035 = vmatprep.subr.bf16.mxu0 %v2453_v0 }
 0x5a7   :  { %v682_v6 = vpop.f32.mrb[24].mxu0 }
 0x5a8   :  { %v689_v10 = vadd.f32 %v682_v6, %v286_v4  ;;  %v1961_v13 = vpop.f32.mrb[25].mxu0 }
 0x5a9   :  { %v685_v47 = vpop.f32.mrb[26].mxu0 }
 0x5aa   :  { %v690_v49 = vadd.f32 %v685_v47, %v289_v8  ;;  %v1962_v15 = vpop.f32.mrb[27].mxu0  ;;  %2332 = vtanh.f32 %v689_v10 }
 0x5ac   :  { %2334 = vtanh.f32 %v690_v49 }
 0x5b4   :  { %v2333_v54 = vpop.eup %2332 }
 0x5b6   :  { %v2335_v17 = vpop.eup %2334 }
 0x5b7   :  { %v698_v55 = vpack.c.bf16 %v2335_v17, %v2333_v54 }
 0x5b9   :  { %1980 = vmatmul.mubr.bf16.vlgmr.msra.gmra.mrb[12].mxu1 %v698_v55 }
 0x5ba   :  { %2004 = vmatpush3.bf16.msra.mxu1 %v2296_v2  ;;  %2019 = vmatprep.mubr.bf16.mxu1 %v2675_v45  ;;  %v2815_v45 = vld [vmem:[#allocation6 + $0x40] sm:$0xff]  }
 0x5bb   :  { %2005 = vmatprep.subr.bf16.mxu1 %v2297_v56 }
 0x5be   :  { %2006 = vmatpush3.bf16.msra.mxu1 %v2297_v56 }
 0x5bf   :  { %2007 = vmatprep.subr.bf16.mxu1 %v2298_v46 }
 0x5c2   :  { %2008 = vmatpush3.bf16.msra.mxu1 %v2298_v46 }
 0x5c3   :  { %2009 = vmatprep.subr.bf16.mxu1 %v2299_v48 }
 0x5c6   :  { %2010 = vmatpush3.bf16.msra.mxu1 %v2299_v48 }
 0x5c7   :  { %2011 = vmatprep.subr.bf16.mxu1 %v2300_v57 }
 0x5ca   :  { %2012 = vmatpush3.bf16.msra.mxu1 %v2300_v57 }
 0x5cb   :  { %2013 = vmatprep.subr.bf16.mxu1 %v2301_v58 }
 0x5ce   :  { %2014 = vmatpush3.bf16.msra.mxu1 %v2301_v58 }
 0x5cf   :  { %2015 = vmatprep.subr.bf16.mxu1 %v2302_v59 }
 0x5d2   :  { %2016 = vmatpush3.bf16.msra.mxu1 %v2302_v59 }
 0x5d3   :  { %2017 = vmatprep.subr.bf16.mxu1 %v2303_v60 }
 0x5d6   :  { %2018 = vmatpush3.bf16.msra.mxu1 %v2303_v60 }
 0x5d7   :  { %2055 = vmatprep.subr.bf16.mxu1 %v2453_v0 }
 0x5d9   :  { %2020 = vmatmul.mubr.bf16.vlgmr.msra.gmra.mrb[16].mxu1 %v2714_v1  ;;  %v2831_v1 = vld [vmem:[#allocation6 + $0x60] sm:$0xff]  }
 0x5da   :  { %2023 = vmatprep.mubr.bf16.mxu1 %v2739_v21  ;;  %2056 = vmatpush3.bf16.msra.mxu1 %v2815_v45 }
 0x5db   :  { %2057 = vmatprep.subr.bf16.mxu1 %v2453_v0 }
 0x5de   :  { %2058 = vmatpush3.bf16.msra.mxu1 %v2819_v61 }
 0x5df   :  { %2059 = vmatprep.subr.bf16.mxu1 %v2453_v0 }
 0x5e1   :  { %2024 = vmatmul.mubr.bf16.gmra.mrb[20].mxu1 %v2764_v33 }
 0x5e2   :  { %2027 = vmatprep.mubr.bf16.mxu1 %v647_v44  ;;  %2060 = vmatpush3.bf16.msra.mxu1 %v2823_v62 }
 0x5e3   :  { %2061 = vmatprep.subr.bf16.mxu1 %v2453_v0 }
 0x5e6   :  { %2062 = vmatpush3.bf16.msra.mxu1 %v2827_v63 }
 0x5e7   :  { %2063 = vmatprep.subr.bf16.mxu1 %v2453_v0 }
 0x5e9   :  { %2028 = vmatmul.mubr.bf16.gmra.mrb[24].mxu1 %v698_v55 }
 0x5ea   :  { %2064 = vmatpush3.bf16.msra.mxu1 %v2831_v1 }
 0x5eb   :  { %2065 = vmatprep.subr.bf16.mxu1 %v2453_v0 }
 0x5ee   :  { %2066 = vmatpush3.bf16.msra.mxu1 %v2835_v3 }
 0x5ef   :  { %2067 = vmatprep.subr.bf16.mxu1 %v2453_v0 }
 0x5f2   :  { %2068 = vmatpush3.bf16.msra.mxu1 %v2839_v5 }
 0x5f3   :  { %2069 = vmatprep.subr.bf16.mxu1 %v2453_v0 }
 0x5f6   :  { %2070 = vmatpush3.bf16.msra.mxu1 %v2843_v7 }
 0x5f7   :  { %2095 = vmatprep.subr.bf16.mxu1 %v2453_v0 }
 0x68c   :  { %v733_v11 = vpop.f32.mrb[12].mxu1 }
 0x68d   :  { %v740_v14 = vadd.f32 %v733_v11, %v294_v9  ;;  %v1981_v16 = vpop.f32.mrb[13].mxu1 }
 0x68e   :  { %v736_v18 = vpop.f32.mrb[14].mxu1 }
 0x68f   :  { %v741_v19 = vadd.f32 %v736_v18, %v297_v12  ;;  %v1982_v21 = vpop.f32.mrb[15].mxu1  ;;  %2336 = vtanh.f32 %v740_v14 }
 0x691   :  { %2338 = vtanh.f32 %v741_v19 }
 0x699   :  { %v2337_v22 = vpop.eup %2336 }
 0x69b   :  { %v2339_v23 = vpop.eup %2338 }
 0x69c   :  { %v749_v24 = vpack.c.bf16 %v2339_v23, %v2337_v22 }
 0x69e   :  { %2000 = vmatmul.mubr.bf16.vlgmr.msra.gmra.mrb[28].mxu0 %v749_v24  ;;  %2031 = vmatprep.mubr.bf16.mxu1 %v749_v24 }
 0x69f   :  { %2036 = vmatpush3.bf16.msra.mxu0 %v2815_v45  ;;  %2051 = vmatprep.mubr.msk.bf16.mxu0 %vm2454_vm0, %v2453_v0 }
 0x6a0   :  { %2037 = vmatprep.subr.bf16.mxu0 %v2453_v0 }
 0x6a3   :  { %2038 = vmatpush3.bf16.msra.mxu0 %v2819_v61 }
 0x6a4   :  { %2039 = vmatprep.subr.bf16.mxu0 %v2453_v0 }
 0x6a7   :  { %2040 = vmatpush3.bf16.msra.mxu0 %v2823_v62 }
 0x6a8   :  { %2041 = vmatprep.subr.bf16.mxu0 %v2453_v0 }
 0x6ab   :  { %2042 = vmatpush3.bf16.msra.mxu0 %v2827_v63 }
 0x6ac   :  { %v2860_v51 = vpop.f32.mrb[16].mxu1  ;;  %2043 = vmatprep.subr.bf16.mxu0 %v2453_v0 }
 0x6ad   :  { %v929_v53 = vpop.f32.mrb[17].mxu1 }
 0x6ae   :  { %v2863_v25 = vpop.f32.mrb[18].mxu1 }
 0x6af   :  { %v932_v27 = vpop.f32.mrb[19].mxu1  ;;  %2044 = vmatpush3.bf16.msra.mxu0 %v2831_v1 }
 0x6b0   :  { %2045 = vmatprep.subr.bf16.mxu0 %v2453_v0 }
 0x6b3   :  { %2046 = vmatpush3.bf16.msra.mxu0 %v2835_v3 }
 0x6b4   :  { %v2868_v28 = vpop.f32.mrb[20].mxu1  ;;  %2047 = vmatprep.subr.bf16.mxu0 %v2453_v0 }
 0x6b5   :  { %v2871_v29 = vpop.f32.mrb[21].mxu1 }
 0x6b6   :  { %v2873_v30 = vpop.f32.mrb[22].mxu1 }
 0x6b7   :  { %v2875_v31 = vpop.f32.mrb[23].mxu1  ;;  %2048 = vmatpush3.bf16.msra.mxu0 %v2839_v5 }
 0x6b8   :  { %2049 = vmatprep.subr.bf16.mxu0 %v2453_v0 }
 0x6bb   :  { %2050 = vmatpush3.bf16.msra.mxu0 %v2843_v7 }
 0x6bc   :  { %v2880_v32 = vpop.f32.mrb[24].mxu1  ;;  %2075 = vmatprep.subr.bf16.mxu0 %v2453_v0 }
 0x6bd   :  { %v2883_v33 = vpop.f32.mrb[25].mxu1 }
 0x6be   :  { %v2885_v34 = vpop.f32.mrb[26].mxu1  ;;  %2052 = vmatmul.mubr.bf16.vlgmr.msra.gmra.mrb[32].mxu0 %v2455_v20  ;;  %v302_v20 = vadd.f32 %v2704_v50, %v2663_v26  ;;  %v2917_v50 = vld [vmem:[%s3058_s4 + $0x1] ss:$0 sm:$0xff] }
 0x6bf   :  { %v2888_v35 = vpop.f32.mrb[27].mxu1  ;;  %2076 = vmatpush3.bf16.msra.mxu0 %v2815_v45  ;;  %2091 = vmatprep.mubr.msk.bf16.mxu0 %vm2454_vm0, %v2453_v0  ;;  %v930_v26 = vadd.f32 %v2917_v50, %v929_v53  ;;  %v933_v4 = vadd.f32 %v2917_v50, %v932_v27  ;;  %v938_v48 = vadd.f32 %v2860_v51, %v2917_v50 }
 0x6c0   :  { %2077 = vmatprep.subr.bf16.mxu0 %v2453_v0  ;;  %v941_v58 = vadd.f32 %v2863_v25, %v2917_v50  ;;  %v946_v19 = vadd.f32 %v2917_v50, %v2871_v29  ;;  %v949_v22 = vadd.f32 %v2917_v50, %v2875_v31  ;;  %v954_v29 = vadd.f32 %v2868_v28, %v2917_v50 }
 0x6c1   :  { %v962_v28 = vadd.f32 %v2917_v50, %v2883_v33 }
 0x6c3   :  { %2078 = vmatpush3.bf16.msra.mxu0 %v2819_v61 }
 0x6c4   :  { %2079 = vmatprep.subr.bf16.mxu0 %v2453_v0 }
 0x6c7   :  { %2080 = vmatpush3.bf16.msra.mxu0 %v2823_v62 }
 0x6c8   :  { %2081 = vmatprep.subr.bf16.mxu0 %v2453_v0 }
 0x6cb   :  { %2082 = vmatpush3.bf16.msra.mxu0 %v2827_v63 }
 0x6cc   :  { %2083 = vmatprep.subr.bf16.mxu0 %v2453_v0 }
 0x6cf   :  { %2084 = vmatpush3.bf16.msra.mxu0 %v2831_v1 }
 0x6d0   :  { %2085 = vmatprep.subr.bf16.mxu0 %v2453_v0 }
 0x6d3   :  { %2086 = vmatpush3.bf16.msra.mxu0 %v2835_v3 }
 0x6d4   :  { %2087 = vmatprep.subr.bf16.mxu0 %v2453_v0 }
 0x6d7   :  { %2088 = vmatpush3.bf16.msra.mxu0 %v2839_v5 }
 0x6d8   :  { %2089 = vmatprep.subr.bf16.mxu0 %v2453_v0 }
 0x6db   :  { %2090 = vmatpush3.bf16.msra.mxu0 %v2843_v7 }
 0x6dc   :  { %2115 = vmatprep.subr.bf16.mxu0 %v2453_v0 }
 0x771   :  { %v784_v36 = vpop.f32.mrb[28].mxu0 }
 0x772   :  { %v791_v38 = vadd.f32 %v784_v36, %v302_v20  ;;  %v2001_v39 = vpop.f32.mrb[29].mxu0 }
 0x773   :  { %v787_v40 = vpop.f32.mrb[30].mxu0 }
 0x774   :  { %v792_v41 = vadd.f32 %v787_v40, %v305_v37  ;;  %v2002_v42 = vpop.f32.mrb[31].mxu0  ;;  %2340 = vtanh.f32 %v791_v38  ;;  %v957_v37 = vadd.f32 %v2873_v30, %v2917_v50 }
 0x776   :  { %2342 = vtanh.f32 %v792_v41 }
 0x77e   :  { %v2341_v43 = vpop.eup %2340 }
 0x780   :  { %v2343_v44 = vpop.eup %2342 }
 0x781   :  { %v822_v2 = vpack.c.bf16 %v2343_v44, %v2341_v43 }
 0x783   :  { %2032 = vmatmul.mubr.bf16.gmra.mrb[28].mxu1 %v822_v2 }
 0x784   :  { %2071 = vmatprep.mubr.msk.bf16.mxu1 %vm2454_vm0, %v2453_v0 }
 0x791   :  { %v1113_v52 = vpop.f32.mrb[32].mxu0 }
 0x792   :  { %v1120_v6 = vadd.f32 %v1113_v52, %v930_v26  ;;  %v2053_v8 = vpop.f32.mrb[33].mxu0  ;;  %v965_v26 = vadd.f32 %v2917_v50, %v2888_v35 }
 0x793   :  { %v1116_v10 = vpop.f32.mrb[34].mxu0 }
 0x794   :  { %v1121_v13 = vadd.f32 %v1116_v10, %v933_v4  ;;  %v2054_v47 = vpop.f32.mrb[35].mxu0  ;;  %2344 = vtanh.f32 %v1120_v6 }
 0x796   :  { %2346 = vtanh.f32 %v1121_v13 }
 0x79e   :  { %v2345_v49 = vpop.eup %2344 }
 0x7a0   :  { %v2347_v15 = vpop.eup %2346 }
 0x7a1   :  { %v1126_v54 = vpack.c.bf16 %v2347_v15, %v2345_v49 }
 0x7a3   :  { %2072 = vmatmul.mubr.bf16.vlgmr.msra.gmra.mrb[32].mxu1 %v1126_v54 }
 0x7a4   :  { %2096 = vmatpush3.bf16.msra.mxu1 %v2815_v45  ;;  %2111 = vmatprep.mubr.msk.bf16.mxu1 %vm2454_vm0, %v2453_v0 }
 0x7a5   :  { %2097 = vmatprep.subr.bf16.mxu1 %v2453_v0 }
 0x7a8   :  { %2098 = vmatpush3.bf16.msra.mxu1 %v2819_v61 }
 0x7a9   :  { %2099 = vmatprep.subr.bf16.mxu1 %v2453_v0 }
 0x7ac   :  { %2100 = vmatpush3.bf16.msra.mxu1 %v2823_v62 }
 0x7ad   :  { %2101 = vmatprep.subr.bf16.mxu1 %v2453_v0 }
 0x7b0   :  { %2102 = vmatpush3.bf16.msra.mxu1 %v2827_v63 }
 0x7b1   :  { %2103 = vmatprep.subr.bf16.mxu1 %v2453_v0 }
 0x7b4   :  { %2104 = vmatpush3.bf16.msra.mxu1 %v2831_v1 }
 0x7b5   :  { %2105 = vmatprep.subr.bf16.mxu1 %v2453_v0 }
 0x7b8   :  { %2106 = vmatpush3.bf16.msra.mxu1 %v2835_v3 }
 0x7b9   :  { %2107 = vmatprep.subr.bf16.mxu1 %v2453_v0 }
 0x7bc   :  { %2108 = vmatpush3.bf16.msra.mxu1 %v2839_v5 }
 0x7bd   :  { %2109 = vmatprep.subr.bf16.mxu1 %v2453_v0 }
 0x7c0   :  { %2110 = vmatpush3.bf16.msra.mxu1 %v2843_v7 }
 0x7c1   :  { %2135 = vmatprep.subr.bf16.mxu1 %v2453_v0 }
 0x856   :  { %v2939_v17 = vpop.f32.mrb[28].mxu1 }
 0x857   :  { %v2941_v55 = vpop.f32.mrb[29].mxu1 }
 0x858   :  { %v2943_v56 = vpop.f32.mrb[30].mxu1 }
 0x859   :  { %v2945_v46 = vpop.f32.mrb[31].mxu1 }
 0x876   :  { %v1161_v57 = vpop.f32.mrb[32].mxu1 }
 0x877   :  { %v1168_v59 = vadd.f32 %v1161_v57, %v938_v48  ;;  %v2073_v60 = vpop.f32.mrb[33].mxu1  ;;  %v1469_v48 = vld [vmem:[#allocation8 + $0x10] sm:$0xff] }
 0x878   :  { %v1164_v9 = vpop.f32.mrb[34].mxu1  ;;  %v1472_v60 = vld [vmem:[#allocation8 + $0x28] sm:$0xff] }
 0x879   :  { %v1169_v11 = vadd.f32 %v1164_v9, %v941_v58  ;;  %v2074_v12 = vpop.f32.mrb[35].mxu1  ;;  %2348 = vtanh.f32 %v1168_v59  ;;  %v1471_v59 = vld [vmem:[#allocation8 + $0x20] sm:$0xff]  ;;  %v1473_v9 = vld [vmem:[#allocation8 + $0x30] sm:$0xff] }
 0x87b   :  { %2350 = vtanh.f32 %v1169_v11  ;;  %v1474_v11 = vld [vmem:[#allocation8 + $0x38] sm:$0xff] }
 0x87c   :  { %v2242_v12 = vpack.c.bf16 %v1474_v11, %v1473_v9 }
 0x883   :  { %v2349_v14 = vpop.eup %2348 }
 0x885   :  { %v2351_v16 = vpop.eup %2350 }
 0x886   :  { %v1174_v18 = vpack.c.bf16 %v2351_v16, %v2349_v14  ;;  %v978_v14 = vadd.f32 %v2917_v50, %v2941_v55  ;;  %v1477_v55 = vld [vmem:[#allocation8 + $0x50] sm:$0xff] }
 0x888   :  { %2092 = vmatmul.mubr.bf16.vlgmr.msra.gmra.mrb[36].mxu0 %v1174_v18  ;;  %v981_v18 = vadd.f32 %v2917_v50, %v2945_v46  ;;  %v1479_v46 = vld [vmem:[#allocation8 + $0x60] sm:$0xff] }
 0x889   :  { %2116 = vmatpush3.bf16.msra.mxu0 %v2815_v45  ;;  %2131 = vmatprep.mubr.msk.bf16.mxu0 %vm2454_vm0, %v2453_v0 }
 0x88a   :  { %2117 = vmatprep.subr.bf16.mxu0 %v2453_v0 }
 0x88d   :  { %2118 = vmatpush3.bf16.msra.mxu0 %v2819_v61 }
 0x88e   :  { %2119 = vmatprep.subr.bf16.mxu0 %v2453_v0 }
 0x891   :  { %2120 = vmatpush3.bf16.msra.mxu0 %v2823_v62 }
 0x892   :  { %2121 = vmatprep.subr.bf16.mxu0 %v2453_v0 }
 0x895   :  { %2122 = vmatpush3.bf16.msra.mxu0 %v2827_v63 }
 0x896   :  { %2123 = vmatprep.subr.bf16.mxu0 %v2453_v0 }
 0x899   :  { %2124 = vmatpush3.bf16.msra.mxu0 %v2831_v1 }
 0x89a   :  { %2125 = vmatprep.subr.bf16.mxu0 %v2453_v0 }
 0x89d   :  { %2126 = vmatpush3.bf16.msra.mxu0 %v2835_v3 }
 0x89e   :  { %2127 = vmatprep.subr.bf16.mxu0 %v2453_v0 }
 0x8a1   :  { %2128 = vmatpush3.bf16.msra.mxu0 %v2839_v5 }
 0x8a2   :  { %2129 = vmatprep.subr.bf16.mxu0 %v2453_v0 }
 0x8a5   :  { %2130 = vmatpush3.bf16.msra.mxu0 %v2843_v7 }
 0x8a6   :  { %2155 = vmatprep.subr.bf16.mxu0 %v2453_v0 }
 0x95b   :  { %v1209_v21 = vpop.f32.mrb[36].mxu0 }
 0x95c   :  { %v1216_v23 = vadd.f32 %v1209_v21, %v946_v19  ;;  %v2093_v24 = vpop.f32.mrb[37].mxu0 }
 0x95d   :  { %v1212_v51 = vpop.f32.mrb[38].mxu0 }
 0x95e   :  { %v1217_v53 = vadd.f32 %v1212_v51, %v949_v22  ;;  %v2094_v25 = vpop.f32.mrb[39].mxu0  ;;  %2352 = vtanh.f32 %v1216_v23 }
 0x960   :  { %2354 = vtanh.f32 %v1217_v53 }
 0x968   :  { %v2353_v27 = vpop.eup %2352 }
 0x96a   :  { %v2355_v20 = vpop.eup %2354 }
 0x96b   :  { %v1222_v36 = vpack.c.bf16 %v2355_v20, %v2353_v27  ;;  %v1475_v27 = vld [vmem:[#allocation8 + $0x40] sm:$0xff]  ;;  %v1476_v20 = vld [vmem:[#allocation8 + $0x48] sm:$0xff] }
 0x96d   :  { %2112 = vmatmul.mubr.bf16.vlgmr.msra.gmra.mrb[36].mxu1 %v1222_v36  ;;  %v2246_v36 = vpack.c.bf16 %v1476_v20, %v1475_v27 }
 0x96e   :  { %2136 = vmatpush3.bf16.msra.mxu1 %v2815_v45  ;;  %2151 = vmatprep.mubr.msk.bf16.mxu1 %vm2454_vm0, %v2453_v0 }
 0x96f   :  { %2137 = vmatprep.subr.bf16.mxu1 %v2453_v0 }
 0x972   :  { %2138 = vmatpush3.bf16.msra.mxu1 %v2819_v61 }
 0x973   :  { %2139 = vmatprep.subr.bf16.mxu1 %v2453_v0 }
 0x976   :  { %2140 = vmatpush3.bf16.msra.mxu1 %v2823_v62 }
 0x977   :  { %2141 = vmatprep.subr.bf16.mxu1 %v2453_v0 }
 0x97a   :  { %2142 = vmatpush3.bf16.msra.mxu1 %v2827_v63 }
 0x97b   :  { %2143 = vmatprep.subr.bf16.mxu1 %v2453_v0 }
 0x97e   :  { %2144 = vmatpush3.bf16.msra.mxu1 %v2831_v1 }
 0x97f   :  { %2145 = vmatprep.subr.bf16.mxu1 %v2453_v0 }
 0x982   :  { %2146 = vmatpush3.bf16.msra.mxu1 %v2835_v3 }
 0x983   :  { %2147 = vmatprep.subr.bf16.mxu1 %v2453_v0 }
 0x986   :  { %2148 = vmatpush3.bf16.msra.mxu1 %v2839_v5 }
 0x987   :  { %2149 = vmatprep.subr.bf16.mxu1 %v2453_v0 }
 0x98a   :  { %2150 = vmatpush3.bf16.msra.mxu1 %v2843_v7 }
 0x98b   :  { %2175 = vmatprep.subr.bf16.mxu1 %v2453_v0 }
 0xa40   :  { %v1257_v31 = vpop.f32.mrb[36].mxu1 }
 0xa41   :  { %v1264_v38 = vadd.f32 %v1257_v31, %v954_v29  ;;  %v2113_v39 = vpop.f32.mrb[37].mxu1  ;;  %v1478_v29 = vld [vmem:[#allocation8 + $0x58] sm:$0xff] }
 0xa42   :  { %v1260_v40 = vpop.f32.mrb[38].mxu1  ;;  %v2250_v31 = vpack.c.bf16 %v1478_v29, %v1477_v55 }
 0xa43   :  { %v1265_v41 = vadd.f32 %v1260_v40, %v957_v37  ;;  %v2114_v42 = vpop.f32.mrb[39].mxu1  ;;  %2356 = vtanh.f32 %v1264_v38  ;;  %v1480_v37 = vld [vmem:[#allocation8 + $0x68] sm:$0xff]  ;;  %v1481_v38 = vld [vmem:[#allocation8 + $0x70] sm:$0xff]  ;;  %v1482_v40 = vld [vmem:[#allocation8 + $0x78] sm:$0xff] }
 0xa44   :  { %v2254_v39 = vpack.c.bf16 %v1480_v37, %v1479_v46  ;;  %v986_v42 = vadd.f32 %v2939_v17, %v2917_v50 }
 0xa45   :  { %2358 = vtanh.f32 %v1265_v41  ;;  %v2258_v41 = vpack.c.bf16 %v1482_v40, %v1481_v38 }
 0xa4d   :  { %v2357_v43 = vpop.eup %2356 }
 0xa4f   :  { %v2359_v44 = vpop.eup %2358 }
 0xa50   :  { %v1270_v2 = vpack.c.bf16 %v2359_v44, %v2357_v43  ;;  %v989_v44 = vadd.f32 %v2943_v56, %v2917_v50 }
 0xa52   :  { %2132 = vmatmul.mubr.bf16.vlgmr.msra.gmra.mrb[40].mxu0 %v1270_v2 }
 0xa53   :  { %2156 = vmatpush3.bf16.msra.mxu0 %v2815_v45  ;;  %2171 = vmatprep.mubr.msk.bf16.mxu0 %vm2454_vm0, %v2453_v0 }
 0xa54   :  { %2157 = vmatprep.subr.bf16.mxu0 %v2453_v0 }
 0xa57   :  { %2158 = vmatpush3.bf16.msra.mxu0 %v2819_v61 }
 0xa58   :  { %2159 = vmatprep.subr.bf16.mxu0 %v2453_v0 }
 0xa5b   :  { %2160 = vmatpush3.bf16.msra.mxu0 %v2823_v62 }
 0xa5c   :  { %2161 = vmatprep.subr.bf16.mxu0 %v2453_v0 }
 0xa5f   :  { %2162 = vmatpush3.bf16.msra.mxu0 %v2827_v63 }
 0xa60   :  { %2163 = vmatprep.subr.bf16.mxu0 %v2453_v0 }
 0xa63   :  { %2164 = vmatpush3.bf16.msra.mxu0 %v2831_v1 }
 0xa64   :  { %2165 = vmatprep.subr.bf16.mxu0 %v2453_v0 }
 0xa67   :  { %2166 = vmatpush3.bf16.msra.mxu0 %v2835_v3 }
 0xa68   :  { %2167 = vmatprep.subr.bf16.mxu0 %v2453_v0 }
 0xa6b   :  { %2168 = vmatpush3.bf16.msra.mxu0 %v2839_v5 }
 0xa6c   :  { %2169 = vmatprep.subr.bf16.mxu0 %v2453_v0 }
 0xa6f   :  { %2170 = vmatpush3.bf16.msra.mxu0 %v2843_v7 }
 0xb25   :  { %v1305_v30 = vpop.f32.mrb[40].mxu0 }
 0xb26   :  { %v1312_v52 = vadd.f32 %v1305_v30, %v962_v28  ;;  %v2133_v4 = vpop.f32.mrb[41].mxu0 }
 0xb27   :  { %v1308_v6 = vpop.f32.mrb[42].mxu0 }
 0xb28   :  { %v1313_v8 = vadd.f32 %v1308_v6, %v965_v26  ;;  %v2134_v10 = vpop.f32.mrb[43].mxu0  ;;  %2360 = vtanh.f32 %v1312_v52 }
 0xb2a   :  { %2362 = vtanh.f32 %v1313_v8  ;;  %v1616_v8 = vld [vmem:[%s3060_s6] ss:$0 sm:$0xff] }
 0xb32   :  { %v2361_v13 = vpop.eup %2360 }
 0xb34   :  { %v2363_v47 = vpop.eup %2362 }
 0xb35   :  { %v1318_v49 = vpack.c.bf16 %v2363_v47, %v2361_v13 }
 0xb37   :  { %2152 = vmatmul.mubr.bf16.vlgmr.msra.gmra.mrb[40].mxu1 %v1318_v49 }
 0xb38   :  { %2176 = vmatpush3.bf16.msra.mxu1 %v2815_v45  ;;  %2191 = vmatprep.mubr.msk.bf16.mxu1 %vm2454_vm0, %v2453_v0  ;;  %v970_v45 = vadd.f32 %v2880_v32, %v2917_v50  ;;  %v1470_v32 = vld [vmem:[#allocation8 + $0x18] sm:$0xff] }
 0xb39   :  { %2177 = vmatprep.subr.bf16.mxu1 %v2453_v0  ;;  %v2234_v58 = vpack.c.bf16 %v1470_v32, %v1469_v48 }
 0xb3c   :  { %2178 = vmatpush3.bf16.msra.mxu1 %v2819_v61 }
 0xb3d   :  { %2179 = vmatprep.subr.bf16.mxu1 %v2453_v0 }
 0xb40   :  { %2180 = vmatpush3.bf16.msra.mxu1 %v2823_v62  ;;  %v973_v62 = vadd.f32 %v2885_v34, %v2917_v50  ;;  %v2238_v34 = vpack.c.bf16 %v1472_v60, %v1471_v59 }
 0xb41   :  { %2181 = vmatprep.subr.bf16.mxu1 %v2453_v0 }
 0xb44   :  { %2182 = vmatpush3.bf16.msra.mxu1 %v2827_v63 }
 0xb45   :  { %2183 = vmatprep.subr.bf16.mxu1 %v2453_v0 }
 0xb48   :  { %2184 = vmatpush3.bf16.msra.mxu1 %v2831_v1 }
 0xb49   :  { %2185 = vmatprep.subr.bf16.mxu1 %v2453_v0 }
 0xb4c   :  { %2186 = vmatpush3.bf16.msra.mxu1 %v2835_v3 }
 0xb4d   :  { %2187 = vmatprep.subr.bf16.mxu1 %v2453_v0 }
 0xb50   :  { %2188 = vmatpush3.bf16.msra.mxu1 %v2839_v5 }
 0xb51   :  { %2189 = vmatprep.subr.bf16.mxu1 %v2453_v0  ;;  %v1467_v0 = vld [vmem:[#allocation8] sm:$0xff] }
 0xb54   :  { %2190 = vmatpush3.bf16.msra.mxu1 %v2843_v7  ;;  %v1468_v7 = vld [vmem:[#allocation8 + $0x8] sm:$0xff] }
 0xb55   :  { %v2230_v57 = vpack.c.bf16 %v1468_v7, %v1467_v0 }
 0xb57   :  { %2231 = vmatprep.subr.bf16.mxu0 %v2230_v57 }
 0xc0a   :  { %v1353_v61 = vpop.f32.mrb[40].mxu1 }
 0xc0b   :  { %v1360_v63 = vadd.f32 %v1353_v61, %v970_v45  ;;  %v2153_v1 = vpop.f32.mrb[41].mxu1 }
 0xc0c   :  { %v1356_v33 = vpop.f32.mrb[42].mxu1 }
 0xc0d   :  { %v1361_v35 = vadd.f32 %v1356_v33, %v973_v62  ;;  %v2154_v3 = vpop.f32.mrb[43].mxu1  ;;  %2364 = vtanh.f32 %v1360_v63 }
 0xc0f   :  { %2366 = vtanh.f32 %v1361_v35 }
 0xc17   :  { %v2365_v15 = vpop.eup %2364 }
 0xc19   :  { %v2367_v5 = vpop.eup %2366 }
 0xc1a   :  { %v1366_v54 = vpack.c.bf16 %v2367_v5, %v2365_v15 }
 0xc1c   :  { %2172 = vmatmul.mubr.bf16.vlgmr.msra.gmra.mrb[44].mxu0 %v1366_v54 }
 0xc1d   :  { %2233 = vmatpush3.bf16.msra.mxu0 %v2230_v57 }
 0xc1e   :  { %2235 = vmatprep.subr.bf16.mxu0 %v2234_v58 }
 0xc21   :  { %2237 = vmatpush3.bf16.msra.mxu0 %v2234_v58 }
 0xc22   :  { %2239 = vmatprep.subr.bf16.mxu0 %v2238_v34 }
 0xc25   :  { %2241 = vmatpush3.bf16.msra.mxu0 %v2238_v34 }
 0xc26   :  { %2243 = vmatprep.subr.bf16.mxu0 %v2242_v12 }
 0xc29   :  { %2245 = vmatpush3.bf16.msra.mxu0 %v2242_v12 }
 0xc2a   :  { %2247 = vmatprep.subr.bf16.mxu0 %v2246_v36 }
 0xc2d   :  { %2249 = vmatpush3.bf16.msra.mxu0 %v2246_v36 }
 0xc2e   :  { %2251 = vmatprep.subr.bf16.mxu0 %v2250_v31 }
 0xc31   :  { %2253 = vmatpush3.bf16.msra.mxu0 %v2250_v31 }
 0xc32   :  { %2255 = vmatprep.subr.bf16.mxu0 %v2254_v39 }
 0xc35   :  { %2257 = vmatpush3.bf16.msra.mxu0 %v2254_v39 }
 0xc36   :  { %2259 = vmatprep.subr.bf16.mxu0 %v2258_v41 }
 0xc39   :  { %2261 = vmatpush3.bf16.msra.mxu0 %v2258_v41 }
 0xcef   :  { %v1401_v16 = vpop.f32.mrb[44].mxu0 }
 0xcf0   :  { %v1408_v19 = vadd.f32 %v1401_v16, %v978_v14  ;;  %v2173_v21 = vpop.f32.mrb[45].mxu0 }
 0xcf1   :  { %v1404_v22 = vpop.f32.mrb[46].mxu0 }
 0xcf2   :  { %v1409_v23 = vadd.f32 %v1404_v22, %v981_v18  ;;  %v2174_v24 = vpop.f32.mrb[47].mxu0  ;;  %2368 = vtanh.f32 %v1408_v19 }
 0xcf4   :  { %2370 = vtanh.f32 %v1409_v23 }
 0xcfc   :  { %v2369_v51 = vpop.eup %2368 }
 0xcfe   :  { %v2371_v53 = vpop.eup %2370 }
 0xcff   :  { %v1414_v25 = vpack.c.bf16 %v2371_v53, %v2369_v51 }
 0xd01   :  { %2192 = vmatmul.mubr.bf16.vlgmr.msra.gmra.mrb[44].mxu1 %v1414_v25 }
 0xdd4   :  { %v1449_v43 = vpop.f32.mrb[44].mxu1 }
 0xdd5   :  { %v1456_v2 = vadd.f32 %v1449_v43, %v986_v42  ;;  %v2193_v28 = vpop.f32.mrb[45].mxu1 }
 0xdd6   :  { %v1452_v30 = vpop.f32.mrb[46].mxu1 }
 0xdd7   :  { %2372 = vtanh.f32 %v1456_v2  ;;  %v1457_v26 = vadd.f32 %v1452_v30, %v989_v44  ;;  %v2194_v52 = vpop.f32.mrb[47].mxu1 }
 0xdd9   :  { %2374 = vtanh.f32 %v1457_v26 }
 0xde1   :  { %v2373_v4 = vpop.eup %2372 }
 0xde2   :  { %2227 = vmatprep.mubr.f32.mxu0 %v2373_v4 }
 0xde3   :  { %v2375_v6 = vpop.eup %2374 }
 0xde4   :  { %2228 = vmatmul.mubr.f32.vlgmr.msra.gmra.mrb[48].mxu0 %v2375_v6 }
 0xeb7   :  { %v2229_v17 = vpop.f32.mrb[48].mxu0 }
 0xeb8   :  { %v1562_v10 = vadd.f32 %v2229_v17, %v1616_v8  ;;  %v1556_v13 = vpop.f32.mrb[49].mxu0 }
 0xeb9   :  { %v1557_v47 = vadd.f32 %v1616_v8, %v1556_v13 }
 0xeba   :  { %1566 = vst [vmem:[%s3061_s7 + $0x8] sm:$0xff] %v1562_v10 }
 0xebb   :  { %1565 = vst [vmem:[%s3061_s7] sm:$0xff] %v1557_v47 }
 0xebc   :  { %1571 = vsyncpa [#allocation5], 1 }
 0xebd   :  { %1572 = vsyncpa [#allocation7], 1 }

</bundles_post_ra>
